<compile_context>
chip_gen: v5e
topology: v5e:2x2
jax: 0.10.0
libtpu: 0.0.40
codegen_flags: <defaults>
</compile_context>

<pallas_src>
import jax
import jax.numpy as jnp
from jax.experimental import pallas as pl
from jax.experimental.pallas import tpu as pltpu

LN_EPS = 1e-5
H1 = 400            # fc1 width / LayerNorm features (fixed by the module)
H2 = 300            # fc2 width (fixed by the module)
H1_PAD = 512        # multiple of 256 -> full MXU tiles on v6e/v7x (and 4x128 on v5e)
H2_PAD = 512
LANE = 128
SUBLANE = 8


def _round_up(n, m):
    return ((n + m - 1) // m) * m


def actor_kernel(x_ref, w1_ref, b1_ref, g_ref, beta_ref,
                 w2_ref, b2_ref, w3_ref, b3_ref, out_ref):
    # x tile: [TILE_B, D_IN_PAD] bf16 (zero-padded features / rows).
    x = x_ref[...]

    # fc1: bf16 x bf16 -> f32 accumulate on the MXU.  Padded rows/cols of W1
    # and padded b1 lanes are zero, so h1[:, H1:] == 0 exactly.
    h1 = jnp.dot(x, w1_ref[...], preferred_element_type=jnp.float32) + b1_ref[...]

    # LayerNorm over the 400 *real* features.  Padded columns are exact zeros,
    # so full-width sums equal sums over the real 400 — only the divisor must
    # be 400.  Single-pass stats keep the two XLU reductions independent.
    inv_n = jnp.float32(1.0 / H1)
    s = jnp.sum(h1, axis=-1, keepdims=True)
    ss = jnp.sum(h1 * h1, axis=-1, keepdims=True)
    mean = s * inv_n
    var = jnp.maximum(ss * inv_n - mean * mean, 0.0)
    h1n = (h1 - mean) * jax.lax.rsqrt(var + LN_EPS)
    # gamma/beta are zero in the padded lanes -> those lanes are re-zeroed and
    # contribute nothing downstream.
    h1n = jnp.maximum(h1n * g_ref[...] + beta_ref[...], 0.0)

    # fc2 + ReLU (bf16 MXU inputs, f32 accumulate).
    h2 = jnp.dot(h1n.astype(jnp.bfloat16), w2_ref[...],
                 preferred_element_type=jnp.float32) + b2_ref[...]
    h2 = jnp.maximum(h2, 0.0)

    # fc3 + tanh, written to a lane-dense (128-wide) padded output block.
    y = jnp.dot(h2.astype(jnp.bfloat16), w3_ref[...],
                preferred_element_type=jnp.float32) + b3_ref[...]
    out_ref[...] = jnp.tanh(y)


def prepare_params(p, num_inputs, num_outputs):
    """Zero-pad logical f32 params to MXU/lane-aligned shapes; weights -> bf16."""
    d_in_pad = max(LANE, _round_up(num_inputs, LANE))
    d_out_pad = max(LANE, _round_up(num_outputs, LANE))

    def pad2(a, rows, cols):
        return jnp.pad(a, ((0, rows - a.shape[0]), (0, cols - a.shape[1])))

    return {
        "w1": pad2(p["w1"], d_in_pad, H1_PAD).astype(jnp.bfloat16),
        "b1": pad2(p["b1"], 1, H1_PAD),
        "gamma": pad2(p["gamma"], 1, H1_PAD),   # zero pad lanes -> re-zeroed in kernel
        "beta": pad2(p["beta"], 1, H1_PAD),
        "w2": pad2(p["w2"], H1_PAD, H2_PAD).astype(jnp.bfloat16),
        "b2": pad2(p["b2"], 1, H2_PAD),
        "w3": pad2(p["w3"], H2_PAD, d_out_pad).astype(jnp.bfloat16),
        "b3": pad2(p["b3"], 1, d_out_pad),
    }


def actor_forward(x, prepared, num_outputs, *, tile_b_max=512):
    """x: [B, num_inputs] f32.  prepared: output of prepare_params.
    Returns [B, num_outputs] f32."""
    B, num_inputs = x.shape
    d_in_pad = prepared["w1"].shape[0]
    d_out_pad = prepared["w3"].shape[1]

    # Batch tile: multiple of 8 (full sublanes), capped at tile_b_max so the
    # per-step working set stays small and realistic batches give >1 grid step
    # (pipelining + megacore split on v7x).
    tile_b = min(tile_b_max, max(SUBLANE, _round_up(B, SUBLANE)))
    b_pad = _round_up(max(B, tile_b), tile_b)

    # Pad batch rows / feature lanes with zeros; cast x to bf16 (halves the
    # input DMA and hits the native bf16 MXU path).
    x_p = jnp.pad(x.astype(jnp.bfloat16),
                  ((0, b_pad - B), (0, d_in_pad - num_inputs)))

    def resident(shape):
        # Constant block index -> loaded once, stays resident across batch tiles.
        return pl.BlockSpec(shape, lambda i: (0, 0))

    out_padded = pl.pallas_call(
        actor_kernel,
        out_shape=jax.ShapeDtypeStruct((b_pad, d_out_pad), jnp.float32),
        grid=(b_pad // tile_b,),
        in_specs=[
            pl.BlockSpec((tile_b, d_in_pad), lambda i: (i, 0)),   # x batch tile
            resident(prepared["w1"].shape),
            resident(prepared["b1"].shape),
            resident(prepared["gamma"].shape),
            resident(prepared["beta"].shape),
            resident(prepared["w2"].shape),
            resident(prepared["b2"].shape),
            resident(prepared["w3"].shape),
            resident(prepared["b3"].shape),
        ],
        out_specs=pl.BlockSpec((tile_b, d_out_pad), lambda i: (i, 0)),
        compiler_params=pltpu.CompilerParams(
            dimension_semantics=("parallel",),       # 2x on v7x dual-TC
            vmem_limit_bytes=32 * 1024 * 1024,       # ample headroom on 64 MiB v7x
        ),
    )(x_p, prepared["w1"], prepared["b1"], prepared["gamma"], prepared["beta"],
      prepared["w2"], prepared["b2"], prepared["w3"], prepared["b3"])

    return out_padded[:B, :num_outputs]


def init_params(key, num_inputs, num_outputs):
    """Deterministic synthetic init (PyTorch-like uniform fan-in scaling), f32."""
    ks = jax.random.split(key, 6)

    def lin(kw, kb, fan_in, fan_out):
        bound = 1.0 / jnp.sqrt(fan_in)
        w = jax.random.uniform(kw, (fan_in, fan_out), jnp.float32, -bound, bound)
        b = jax.random.uniform(kb, (1, fan_out), jnp.float32, -bound, bound)
        return w, b

    w1, b1 = lin(ks[0], ks[1], num_inputs, H1)
    w2, b2 = lin(ks[2], ks[3], H1, H2)
    w3, b3 = lin(ks[4], ks[5], H2, num_outputs)
    return {
        "w1": w1, "b1": b1,
        "gamma": jnp.ones((1, H1), jnp.float32),   # nn.LayerNorm default weight
        "beta": jnp.zeros((1, H1), jnp.float32),   # nn.LayerNorm default bias
        "w2": w2, "b2": b2,
        "w3": w3, "b3": b3,
    }


def actor_reference(x, p):
    """Plain-JAX f32 reference matching the PyTorch module."""
    h1 = x @ p["w1"] + p["b1"]
    mean = jnp.mean(h1, -1, keepdims=True)
    var = jnp.mean((h1 - mean) ** 2, -1, keepdims=True)
    h1 = (h1 - mean) * jax.lax.rsqrt(var + LN_EPS) * p["gamma"] + p["beta"]
    h1 = jnp.maximum(h1, 0.0)
    h2 = jnp.maximum(h1 @ p["w2"] + p["b2"], 0.0)
    return jnp.tanh(h2 @ p["w3"] + p["b3"])


if __name__ == "__main__":
    # HalfCheetah: observation dim 17, action dim 6.  Small batch for the demo;
    # real rollout/training batches (hundreds-thousands of rows) exercise the
    # batch-tiled pipeline and the MXU properly.
    B, NUM_INPUTS, NUM_OUTPUTS = 4, 17, 6

    key = jax.random.PRNGKey(0)
    k_x, k_p = jax.random.split(key)
    x = jax.random.normal(k_x, (B, NUM_INPUTS), jnp.float32)
    params = init_params(k_p, NUM_INPUTS, NUM_OUTPUTS)
    prepared = prepare_params(params, NUM_INPUTS, NUM_OUTPUTS)

    out = jax.block_until_ready(actor_forward(x, prepared, NUM_OUTPUTS))
    ref = jax.block_until_ready(actor_reference(x, params))

    assert out.shape == (B, NUM_OUTPUTS)
    # bf16 matmul inputs => looser tolerance vs the f32 reference.
    assert jnp.allclose(out, ref, atol=2e-2, rtol=2e-2), "mismatch vs reference"

    print("KERNEL_OK")
</pallas_src>

<mosaic_0001>
module attributes {stable_mosaic.version = 11 : i64} {
  func.func @actor_kernel(%arg0: i32, %arg1: memref<8x128xbf16, #tpu.memory_space<vmem>>, %arg2: memref<128x512xbf16, #tpu.memory_space<vmem>>, %arg3: memref<1x512xf32, #tpu.memory_space<vmem>>, %arg4: memref<1x512xf32, #tpu.memory_space<vmem>>, %arg5: memref<1x512xf32, #tpu.memory_space<vmem>>, %arg6: memref<512x512xbf16, #tpu.memory_space<vmem>>, %arg7: memref<1x512xf32, #tpu.memory_space<vmem>>, %arg8: memref<512x128xbf16, #tpu.memory_space<vmem>>, %arg9: memref<1x128xf32, #tpu.memory_space<vmem>>, %arg10: memref<8x128xf32, #tpu.memory_space<vmem>>) attributes {dimension_semantics = [#tpu.dimension_semantics<parallel>], iteration_bounds = array<i64: 1>, scalar_prefetch = 0 : i64, scratch_operands = 0 : i64, tpu.core_type = #tpu.core_type<tc>, window_params = [{transform_indices = @transform_0, window_bounds = array<i64: 8, 128>}, {pipeline_mode = #tpu.pipeline_mode<synchronous>, transform_indices = @transform_1, window_bounds = array<i64: 128, 512>}, {pipeline_mode = #tpu.pipeline_mode<synchronous>, transform_indices = @transform_2, window_bounds = array<i64: 1, 512>}, {pipeline_mode = #tpu.pipeline_mode<synchronous>, transform_indices = @transform_3, window_bounds = array<i64: 1, 512>}, {pipeline_mode = #tpu.pipeline_mode<synchronous>, transform_indices = @transform_4, window_bounds = array<i64: 1, 512>}, {pipeline_mode = #tpu.pipeline_mode<synchronous>, transform_indices = @transform_5, window_bounds = array<i64: 512, 512>}, {pipeline_mode = #tpu.pipeline_mode<synchronous>, transform_indices = @transform_6, window_bounds = array<i64: 1, 512>}, {pipeline_mode = #tpu.pipeline_mode<synchronous>, transform_indices = @transform_7, window_bounds = array<i64: 512, 128>}, {pipeline_mode = #tpu.pipeline_mode<synchronous>, transform_indices = @transform_8, window_bounds = array<i64: 1, 128>}, {transform_indices = @transform_9, window_bounds = array<i64: 8, 128>}]} {
    %c0 = arith.constant 0 : index
    %c0_0 = arith.constant 0 : index
    %0 = vector.load %arg1[%c0, %c0_0] : memref<8x128xbf16, #tpu.memory_space<vmem>>, vector<8x128xbf16>
    %c0_1 = arith.constant 0 : index
    %c0_2 = arith.constant 0 : index
    %1 = vector.load %arg2[%c0_1, %c0_2] : memref<128x512xbf16, #tpu.memory_space<vmem>>, vector<128x512xbf16>
    %cst = arith.constant dense<0.000000e+00> : vector<8x512xf32>
    %2 = tpu.matmul %0, %1, %cst {dimension_numbers = #tpu.dot_dimension_numbers<[1], [0], [0], [1], [0, 0, 1, 1], [], []>} : vector<8x128xbf16>, vector<128x512xbf16>, vector<8x512xf32> -> vector<8x512xf32>
    %c0_3 = arith.constant 0 : index
    %c0_4 = arith.constant 0 : index
    %3 = vector.load %arg3[%c0_3, %c0_4] : memref<1x512xf32, #tpu.memory_space<vmem>>, vector<1x512xf32>
    %4 = vector.broadcast %3 : vector<1x512xf32> to vector<8x512xf32>
    %5 = arith.addf %2, %4 : vector<8x512xf32>
    %cst_5 = arith.constant dense<0.000000e+00> : vector<8xf32>
    %6 = vector.multi_reduction <add>, %5, %cst_5 [1] : vector<8x512xf32> to vector<8xf32>
    %7 = vector.shape_cast %6 : vector<8xf32> to vector<8x1xf32>
    %8 = arith.mulf %5, %5 : vector<8x512xf32>
    %cst_6 = arith.constant dense<0.000000e+00> : vector<8xf32>
    %9 = vector.multi_reduction <add>, %8, %cst_6 [1] : vector<8x512xf32> to vector<8xf32>
    %10 = vector.shape_cast %9 : vector<8xf32> to vector<8x1xf32>
    %cst_7 = arith.constant 2.500000e-03 : f32
    %11 = vector.broadcast %cst_7 : f32 to vector<8x1xf32>
    %12 = arith.mulf %7, %11 : vector<8x1xf32>
    %cst_8 = arith.constant 2.500000e-03 : f32
    %13 = vector.broadcast %cst_8 : f32 to vector<8x1xf32>
    %14 = arith.mulf %10, %13 : vector<8x1xf32>
    %15 = arith.mulf %12, %12 : vector<8x1xf32>
    %16 = arith.subf %14, %15 : vector<8x1xf32>
    %cst_9 = arith.constant 0.000000e+00 : f32
    %17 = vector.broadcast %cst_9 : f32 to vector<8x1xf32>
    %18 = arith.maximumf %16, %17 : vector<8x1xf32>
    %19 = vector.broadcast %12 : vector<8x1xf32> to vector<8x512xf32>
    %20 = arith.subf %5, %19 : vector<8x512xf32>
    %cst_10 = arith.constant 9.99999974E-6 : f32
    %21 = vector.broadcast %cst_10 : f32 to vector<8x1xf32>
    %22 = arith.addf %18, %21 : vector<8x1xf32>
    %23 = math.rsqrt %22 : vector<8x1xf32>
    %24 = vector.broadcast %23 : vector<8x1xf32> to vector<8x512xf32>
    %25 = arith.mulf %20, %24 : vector<8x512xf32>
    %c0_11 = arith.constant 0 : index
    %c0_12 = arith.constant 0 : index
    %26 = vector.load %arg4[%c0_11, %c0_12] : memref<1x512xf32, #tpu.memory_space<vmem>>, vector<1x512xf32>
    %27 = vector.broadcast %26 : vector<1x512xf32> to vector<8x512xf32>
    %28 = arith.mulf %25, %27 : vector<8x512xf32>
    %c0_13 = arith.constant 0 : index
    %c0_14 = arith.constant 0 : index
    %29 = vector.load %arg5[%c0_13, %c0_14] : memref<1x512xf32, #tpu.memory_space<vmem>>, vector<1x512xf32>
    %30 = vector.broadcast %29 : vector<1x512xf32> to vector<8x512xf32>
    %31 = arith.addf %28, %30 : vector<8x512xf32>
    %cst_15 = arith.constant 0.000000e+00 : f32
    %32 = vector.broadcast %cst_15 : f32 to vector<8x512xf32>
    %33 = arith.maximumf %31, %32 : vector<8x512xf32>
    %34 = arith.truncf %33 : vector<8x512xf32> to vector<8x512xbf16>
    %c0_16 = arith.constant 0 : index
    %c0_17 = arith.constant 0 : index
    %35 = vector.load %arg6[%c0_16, %c0_17] : memref<512x512xbf16, #tpu.memory_space<vmem>>, vector<512x512xbf16>
    %cst_18 = arith.constant dense<0.000000e+00> : vector<8x512xf32>
    %36 = tpu.matmul %34, %35, %cst_18 {dimension_numbers = #tpu.dot_dimension_numbers<[1], [0], [0], [1], [0, 0, 1, 1], [], []>} : vector<8x512xbf16>, vector<512x512xbf16>, vector<8x512xf32> -> vector<8x512xf32>
    %c0_19 = arith.constant 0 : index
    %c0_20 = arith.constant 0 : index
    %37 = vector.load %arg7[%c0_19, %c0_20] : memref<1x512xf32, #tpu.memory_space<vmem>>, vector<1x512xf32>
    %38 = vector.broadcast %37 : vector<1x512xf32> to vector<8x512xf32>
    %39 = arith.addf %36, %38 : vector<8x512xf32>
    %cst_21 = arith.constant 0.000000e+00 : f32
    %40 = vector.broadcast %cst_21 : f32 to vector<8x512xf32>
    %41 = arith.maximumf %39, %40 : vector<8x512xf32>
    %42 = arith.truncf %41 : vector<8x512xf32> to vector<8x512xbf16>
    %c0_22 = arith.constant 0 : index
    %c0_23 = arith.constant 0 : index
    %43 = vector.load %arg8[%c0_22, %c0_23] : memref<512x128xbf16, #tpu.memory_space<vmem>>, vector<512x128xbf16>
    %cst_24 = arith.constant dense<0.000000e+00> : vector<8x128xf32>
    %44 = tpu.matmul %42, %43, %cst_24 {dimension_numbers = #tpu.dot_dimension_numbers<[1], [0], [0], [1], [0, 0, 1, 1], [], []>} : vector<8x512xbf16>, vector<512x128xbf16>, vector<8x128xf32> -> vector<8x128xf32>
    %c0_25 = arith.constant 0 : index
    %c0_26 = arith.constant 0 : index
    %45 = vector.load %arg9[%c0_25, %c0_26] : memref<1x128xf32, #tpu.memory_space<vmem>>, vector<1x128xf32>
    %46 = vector.broadcast %45 : vector<1x128xf32> to vector<8x128xf32>
    %47 = arith.addf %44, %46 : vector<8x128xf32>
    %48 = math.tanh %47 : vector<8x128xf32>
    %c0_27 = arith.constant 0 : index
    %c0_28 = arith.constant 0 : index
    %49 = vector.load %arg10[%c0_27, %c0_28] : memref<8x128xf32, #tpu.memory_space<vmem>>, vector<8x128xf32>
    tpu.vector_store %arg10[%c0_27, %c0_28], %48 {strides = array<i32>} : memref<8x128xf32, #tpu.memory_space<vmem>>, vector<8x128xf32>,
    return
  }
  func.func @transform_0(%arg0: i32) -> (i32, i32) {
    %c0_i32 = arith.constant 0 : i32
    %c0_i32_0 = arith.constant 0 : i32
    return %arg0, %c0_i32 : i32, i32
  }
  func.func @transform_1(%arg0: i32) -> (i32, i32) {
    %c0_i32 = arith.constant 0 : i32
    %c0_i32_0 = arith.constant 0 : i32
    %c0_i32_1 = arith.constant 0 : i32
    return %c0_i32, %c0_i32_0 : i32, i32
  }
  func.func @transform_2(%arg0: i32) -> (i32, i32) {
    %c0_i32 = arith.constant 0 : i32
    %c0_i32_0 = arith.constant 0 : i32
    %c0_i32_1 = arith.constant 0 : i32
    return %c0_i32, %c0_i32_0 : i32, i32
  }
  func.func @transform_3(%arg0: i32) -> (i32, i32) {
    %c0_i32 = arith.constant 0 : i32
    %c0_i32_0 = arith.constant 0 : i32
    %c0_i32_1 = arith.constant 0 : i32
    return %c0_i32, %c0_i32_0 : i32, i32
  }
  func.func @transform_4(%arg0: i32) -> (i32, i32) {
    %c0_i32 = arith.constant 0 : i32
    %c0_i32_0 = arith.constant 0 : i32
    %c0_i32_1 = arith.constant 0 : i32
    return %c0_i32, %c0_i32_0 : i32, i32
  }
  func.func @transform_5(%arg0: i32) -> (i32, i32) {
    %c0_i32 = arith.constant 0 : i32
    %c0_i32_0 = arith.constant 0 : i32
    %c0_i32_1 = arith.constant 0 : i32
    return %c0_i32, %c0_i32_0 : i32, i32
  }
  func.func @transform_6(%arg0: i32) -> (i32, i32) {
    %c0_i32 = arith.constant 0 : i32
    %c0_i32_0 = arith.constant 0 : i32
    %c0_i32_1 = arith.constant 0 : i32
    return %c0_i32, %c0_i32_0 : i32, i32
  }
  func.func @transform_7(%arg0: i32) -> (i32, i32) {
    %c0_i32 = arith.constant 0 : i32
    %c0_i32_0 = arith.constant 0 : i32
    %c0_i32_1 = arith.constant 0 : i32
    return %c0_i32, %c0_i32_0 : i32, i32
  }
  func.func @transform_8(%arg0: i32) -> (i32, i32) {
    %c0_i32 = arith.constant 0 : i32
    %c0_i32_0 = arith.constant 0 : i32
    %c0_i32_1 = arith.constant 0 : i32
    return %c0_i32, %c0_i32_0 : i32, i32
  }
  func.func @transform_9(%arg0: i32) -> (i32, i32) {
    %c0_i32 = arith.constant 0 : i32
    %c0_i32_0 = arith.constant 0 : i32
    return %arg0, %c0_i32 : i32, i32
  }
}

</mosaic_0001>

<bundles_post_ra>
// kernel: tpu_custom_call.1
= control target key start
LH: loop header
LB: loop body
LE: loop exit
PB: predicated region body
PF: predicated region fallthrough
CT: control target
= control target key end

     0   :  { %14 = vsyncpa [#allocation3], 0  ;;  %s3130_s0 = inlined_call_operand.hbm [shape: bf16[8,128], index: 0, kind: input, shape index: {}]   ;;  %s3131_s1 = inlined_call_operand.hbm [shape: bf16[128,512], index: 1, kind: input, shape index: {}]   ;;  %s3132_s2 = inlined_call_operand.hbm [shape: f32[1,512], index: 2, kind: input, shape index: {}]   ;;  %s3133_s3 = inlined_call_operand.hbm [shape: f32[1,512], index: 3, kind: input, shape index: {}]   ;;  %s3134_s4 = inlined_call_operand.hbm [shape: f32[1,512], index: 4, kind: input, shape index: {}]   ;;  %s3135_s5 = inlined_call_operand.hbm [shape: bf16[512,512], index: 5, kind: input, shape index: {}]   ;;  %s3136_s6 = inlined_call_operand.vmem [shape: f32[1,512], index: 6, kind: input, shape index: {}]   ;;  %s3137_s7 = inlined_call_operand.hbm [shape: bf16[512,128], index: 7, kind: input, shape index: {}]   ;;  %s3138_s8 = inlined_call_operand.vmem [shape: f32[1,128], index: 8, kind: input, shape index: {}]   ;;  %s3139_s9 = inlined_call_operand.hbm [shape: f32[8,128], index: 9, kind: output, shape index: {}]  }
   0x1   :  { %15 = vsyncpa [#allocation6], 0 }
   0x2   :  { %16 = vsyncpa [#allocation9], 0 }
   0x3   :  { %17 = vsyncpa [#allocation12], 0  ;;  %s34_s11 = sshll.u32 %s3131_s1, 4  ;;  %s35_s11 = int_to_ptr.hbm [resolvable:$true] %s34_s11 }
   0x4   :  { %18 = vsyncpa [#allocation4], 0  ;;  %s2970_s12 = smov [#allocation5]   ;;  %s59_s16 = sshll.u32 %s3133_s3, 4  ;;  %s60_s16 = int_to_ptr.hbm [resolvable:$true] %s59_s16 }
   0x5   :  { %s36_s13 = sshll.u32 %s2970_s12, 4  ;;  %s2971_s17 = smov 256   ;;  %s37_s13 = int_to_ptr.vmem [resolvable:$true] %s36_s13 }
   0x6   :  { %s2972_s18 = smov 16   ;;  %s2973_s19 = smov [#allocation8]  }
   0x7   :  { %42 = dma.hbm_to_vmem [thread:$0]  %s35_s11, 4096, %s37_s13, [#allocation6], %s2971_s17, %s2971_s17, %s2972_s18  }
   0x8   :  { %s61_s20 = sshll.u32 %s2973_s19, 4  ;;  %s80_s23 = sshll.u32 %s3135_s5, 4  ;;  %s62_s20 = int_to_ptr.vmem [resolvable:$true] %s61_s20  ;;  %s81_s23 = int_to_ptr.hbm [resolvable:$true] %s80_s23 }
   0x9   :  { %64 = dma.hbm_to_vmem [thread:$0]  %s60_s16, 64, %s62_s20, [#allocation9]  }
   0xa   :  { %s24_s25 = sshll.u32 %s3130_s0, 4  ;;  %s2974_s26 = smov [#allocation11]   ;;  %s25_s25 = int_to_ptr.hbm [resolvable:$true] %s24_s25 }
   0xb   :  { %s82_s27 = sshll.u32 %s2974_s26, 4  ;;  %s2975_s3 = smov [#allocation2]   ;;  %s83_s27 = int_to_ptr.vmem [resolvable:$true] %s82_s27 }
   0xc   :  { %88 = dma.hbm_to_vmem [thread:$0]  %s81_s23, 16384, %s83_s27, [#allocation12], %s2971_s17, %s2971_s17, %s2972_s18  }
   0xd   :  { %s26_s28 = sshll.u32 %s2975_s3, 4  ;;  %s48_s10 = sshll.u32 %s3132_s2, 4  ;;  %s27_s28 = int_to_ptr.vmem [resolvable:$true] %s26_s28  ;;  %s49_s10 = int_to_ptr.hbm [resolvable:$true] %s48_s10 }
   0xe   :  { %29 = dma.hbm_to_vmem [thread:$0]  %s25_s25, 64, %s27_s28, [#allocation3]  }
   0xf   :  { %s70_s12 = sshll.u32 %s3134_s4, 4  ;;  %s2976_s13 = smov [#allocation7]   ;;  %s71_s12 = int_to_ptr.hbm [resolvable:$true] %s70_s12 }
  0x10   :  { %s50_s0 = sshll.u32 %s2976_s13, 4  ;;  %s2977_s14 = smov [#allocation10]   ;;  %s51_s0 = int_to_ptr.vmem [resolvable:$true] %s50_s0 }
  0x11   :  { %53 = dma.hbm_to_vmem [thread:$0]  %s49_s10, 64, %s51_s0, [#allocation6]  }
  0x12   :  { %s72_s15 = sshll.u32 %s2977_s14, 4  ;;  %s95_s18 = sshll.u32 %s3137_s7, 4  ;;  %s73_s15 = int_to_ptr.vmem [resolvable:$true] %s72_s15  ;;  %s96_s18 = int_to_ptr.hbm [resolvable:$true] %s95_s18 }
  0x13   :  { %75 = dma.hbm_to_vmem [thread:$0]  %s71_s12, 64, %s73_s15, [#allocation9]  }
  0x14   :  { %s2978_s2 = smov [#allocation13]   ;;  %s2979_s20 = smov 64  }
  0x15   :  { %s97_s19 = sshll.u32 %s2978_s2, 4  ;;  %s2980_s21 = smov 4   ;;  %s98_s19 = int_to_ptr.vmem [resolvable:$true] %s97_s19 }
  0x16   :  { %103 = dma.hbm_to_vmem [thread:$0]  %s96_s18, 4096, %s98_s19, [#allocation12], %s2979_s20, %s2979_s20, %s2980_s21  }
  0x17   :  { %2960 = dma.done.wait [#allocation3], 64  }
  0x18   :  { %2961 = vsyncadd [#allocation3], 4294967232 }
  0x19   :  { %2962 = dma.done.wait [#allocation6], 4160  }
  0x1a   :  { %2963 = vsyncadd [#allocation6], 4294963136 }
  0x1b   :  { %2964 = dma.done.wait [#allocation9], 128  }
  0x1c   :  { %2965 = vsyncadd [#allocation9], 4294967168 }
  0x1d   :  { %2966 = dma.done.wait [#allocation12], 20480  }
  0x1e   :  { %2967 = vsyncadd [#allocation12], 4294946816  ;;  %v1905_v0 = vld [vmem:[#allocation5 + $0xe0] sm:$0xf]  ;;  %v2589_v1 = vld [vmem:[#allocation5 + $0xec] sm:$0xf0] }
  0x1f   :  { %v2587_v2 = vld [vmem:[#allocation5 + $0xe4] sm:$0xf]  ;;  %v1906_v3 = vor.u32 %v2589_v1, %v1905_v0  ;;  %v1907_v4 = vld [vmem:[#allocation5 + $0xf0] sm:$0xf0]  ;;  %v1913_v5 = vld [vmem:[#allocation5 + $0xe8] sm:$0xf] }
  0x20   :  { %v2590_v6 = vld [vmem:[#allocation5 + $0xf4] sm:$0xf0]  ;;  %v1910_v7 = vor.u32 %v2587_v2, %v1907_v4  ;;  %v2588_v9 = vld [vmem:[#allocation5 + $0xec] sm:$0xf]  ;;  %v1915_v10 = vld [vmem:[#allocation5 + $0xf8] sm:$0xf0] }
  0x21   :  { %v1914_v8 = vor.u32 %v2590_v6, %v1913_v5  ;;  %v1889_v11 = vld [vmem:[#allocation5 + $0xc0] sm:$0xf]  ;;  %337 = vmatpush.bf16.msra.mxu0 %v1906_v3  ;;  %v1918_v12 = vor.u32 %v2588_v9, %v1915_v10  ;;  %v2585_v13 = vld [vmem:[#allocation5 + $0xcc] sm:$0xf0]  ;;  %v2583_v14 = vld [vmem:[#allocation5 + $0xc4] sm:$0xf] }
  0x22   :  { %v1891_v15 = vld [vmem:[#allocation5 + $0xd0] sm:$0xf0]  ;;  %350 = vmatpush.bf16.msra.mxu1 %v1910_v7  ;;  %v1890_v16 = vor.u32 %v2585_v13, %v1889_v11  ;;  %v1897_v18 = vld [vmem:[#allocation5 + $0xc8] sm:$0xf]  ;;  %v2586_v19 = vld [vmem:[#allocation5 + $0xd4] sm:$0xf0] }
  0x23   :  { %363 = vmatpush.bf16.msra.mxu2 %v1914_v8  ;;  %v1894_v17 = vor.u32 %v2583_v14, %v1891_v15  ;;  %v2584_v20 = vld [vmem:[#allocation5 + $0xcc] sm:$0xf]  ;;  %376 = vmatpush.bf16.msra.mxu3 %v1918_v12  ;;  %v1898_v21 = vor.u32 %v2586_v19, %v1897_v18  ;;  %v1899_v22 = vld [vmem:[#allocation5 + $0xd8] sm:$0xf0]  ;;  %v1873_v23 = vld [vmem:[#allocation5 + $0xa0] sm:$0xf] }
  0x24   :  { %v2581_v24 = vld [vmem:[#allocation5 + $0xac] sm:$0xf0]  ;;  %v1902_v25 = vor.u32 %v2584_v20, %v1899_v22  ;;  %v2579_v26 = vld [vmem:[#allocation5 + $0xa4] sm:$0xf]  ;;  %v1875_v27 = vld [vmem:[#allocation5 + $0xb0] sm:$0xf0] }
  0x25   :  { %v1881_v28 = vld [vmem:[#allocation5 + $0xa8] sm:$0xf]  ;;  %338 = vmatpush.bf16.msra.mxu0 %v1890_v16  ;;  %v1874_v29 = vor.u32 %v2581_v24, %v1873_v23  ;;  %v2582_v30 = vld [vmem:[#allocation5 + $0xb4] sm:$0xf0]  ;;  %v2580_v31 = vld [vmem:[#allocation5 + $0xac] sm:$0xf]  ;;  %v1878_v33 = vor.u32 %v2579_v26, %v1875_v27 }
  0x26   :  { %v1883_v32 = vld [vmem:[#allocation5 + $0xb8] sm:$0xf0]  ;;  %351 = vmatpush.bf16.msra.mxu1 %v1894_v17  ;;  %v1882_v34 = vor.u32 %v2582_v30, %v1881_v28  ;;  %v1857_v35 = vld [vmem:[#allocation5 + $0x80] sm:$0xf]  ;;  %v2577_v36 = vld [vmem:[#allocation5 + $0x8c] sm:$0xf0] }
  0x27   :  { %364 = vmatpush.bf16.msra.mxu2 %v1898_v21  ;;  %v2575_v37 = vld [vmem:[#allocation5 + $0x84] sm:$0xf]  ;;  %377 = vmatpush.bf16.msra.mxu3 %v1902_v25  ;;  %v1886_v38 = vor.u32 %v2580_v31, %v1883_v32  ;;  %v1859_v39 = vld [vmem:[#allocation5 + $0x90] sm:$0xf0]  ;;  %v1865_v40 = vld [vmem:[#allocation5 + $0x88] sm:$0xf]  ;;  %v1858_v44 = vor.u32 %v2577_v36, %v1857_v35 }
  0x28   :  { %v2578_v41 = vld [vmem:[#allocation5 + $0x94] sm:$0xf0]  ;;  %v2576_v42 = vld [vmem:[#allocation5 + $0x8c] sm:$0xf]  ;;  %v1867_v43 = vld [vmem:[#allocation5 + $0x98] sm:$0xf0]  ;;  %v1862_v45 = vor.u32 %v2575_v37, %v1859_v39 }
  0x29   :  { %339 = vmatpush.bf16.msra.mxu0 %v1874_v29  ;;  %v1866_v46 = vor.u32 %v2578_v41, %v1865_v40  ;;  %v1841_v47 = vld [vmem:[#allocation5 + $0x60] sm:$0xf]  ;;  %v2573_v48 = vld [vmem:[#allocation5 + $0x6c] sm:$0xf0]  ;;  %v2571_v49 = vld [vmem:[#allocation5 + $0x64] sm:$0xf]  ;;  %v1870_v50 = vor.u32 %v2576_v42, %v1867_v43 }
  0x2a   :  { %352 = vmatpush.bf16.msra.mxu1 %v1878_v33  ;;  %v1843_v51 = vld [vmem:[#allocation5 + $0x70] sm:$0xf0]  ;;  %v1849_v52 = vld [vmem:[#allocation5 + $0x68] sm:$0xf]  ;;  %v2574_v53 = vld [vmem:[#allocation5 + $0x74] sm:$0xf0]  ;;  %v1842_v56 = vor.u32 %v2573_v48, %v1841_v47 }
  0x2b   :  { %365 = vmatpush.bf16.msra.mxu2 %v1882_v34  ;;  %378 = vmatpush.bf16.msra.mxu3 %v1886_v38  ;;  %v2572_v54 = vld [vmem:[#allocation5 + $0x6c] sm:$0xf]  ;;  %v1851_v55 = vld [vmem:[#allocation5 + $0x78] sm:$0xf0]  ;;  %v1846_v57 = vor.u32 %v2571_v49, %v1843_v51  ;;  %v1850_v58 = vor.u32 %v2574_v53, %v1849_v52  ;;  %v1825_v59 = vld [vmem:[#allocation5 + $0x40] sm:$0xf] }
  0x2c   :  { %v2569_v60 = vld [vmem:[#allocation5 + $0x4c] sm:$0xf0]  ;;  %v2567_v61 = vld [vmem:[#allocation5 + $0x44] sm:$0xf]  ;;  %v1854_v62 = vor.u32 %v2572_v54, %v1851_v55  ;;  %v1827_v63 = vld [vmem:[#allocation5 + $0x50] sm:$0xf0] }
  0x2d   :  { %340 = vmatpush.bf16.msra.mxu0 %v1858_v44  ;;  %v1833_v0 = vld [vmem:[#allocation5 + $0x48] sm:$0xf]  ;;  %v2570_v1 = vld [vmem:[#allocation5 + $0x54] sm:$0xf0]  ;;  %v2568_v2 = vld [vmem:[#allocation5 + $0x4c] sm:$0xf]  ;;  %v1826_v4 = vor.u32 %v2569_v60, %v1825_v59  ;;  %v1830_v5 = vor.u32 %v2567_v61, %v1827_v63 }
  0x2e   :  { %353 = vmatpush.bf16.msra.mxu1 %v1862_v45  ;;  %v1835_v3 = vld [vmem:[#allocation5 + $0x58] sm:$0xf0]  ;;  %v1834_v6 = vor.u32 %v2570_v1, %v1833_v0  ;;  %v1809_v7 = vld [vmem:[#allocation5 + $0x20] sm:$0xf]  ;;  %v2565_v8 = vld [vmem:[#allocation5 + $0x2c] sm:$0xf0] }
  0x2f   :  { %366 = vmatpush.bf16.msra.mxu2 %v1866_v46  ;;  %379 = vmatpush.bf16.msra.mxu3 %v1870_v50  ;;  %v2563_v9 = vld [vmem:[#allocation5 + $0x24] sm:$0xf]  ;;  %v1838_v10 = vor.u32 %v2568_v2, %v1835_v3  ;;  %v1811_v11 = vld [vmem:[#allocation5 + $0x30] sm:$0xf0]  ;;  %v1817_v12 = vld [vmem:[#allocation5 + $0x28] sm:$0xf]  ;;  %v1810_v16 = vor.u32 %v2565_v8, %v1809_v7 }
  0x30   :  { %v2566_v13 = vld [vmem:[#allocation5 + $0x34] sm:$0xf0]  ;;  %v2564_v14 = vld [vmem:[#allocation5 + $0x2c] sm:$0xf]  ;;  %v1819_v15 = vld [vmem:[#allocation5 + $0x38] sm:$0xf0]  ;;  %v1814_v17 = vor.u32 %v2563_v9, %v1811_v11 }
  0x31   :  { %341 = vmatpush.bf16.msra.mxu0 %v1842_v56  ;;  %v1818_v18 = vor.u32 %v2566_v13, %v1817_v12  ;;  %v1793_v19 = vld [vmem:[#allocation5] sm:$0xf]  ;;  %v2561_v20 = vld [vmem:[#allocation5 + $0xc] sm:$0xf0]  ;;  %v2559_v21 = vld [vmem:[#allocation5 + $0x4] sm:$0xf]  ;;  %v1822_v22 = vor.u32 %v2564_v14, %v1819_v15 }
  0x32   :  { %354 = vmatpush.bf16.msra.mxu1 %v1846_v57  ;;  %v1795_v23 = vld [vmem:[#allocation5 + $0x10] sm:$0xf0]  ;;  %v1801_v24 = vld [vmem:[#allocation5 + $0x8] sm:$0xf]  ;;  %v2562_v25 = vld [vmem:[#allocation5 + $0x14] sm:$0xf0]  ;;  %v1794_v28 = vor.u32 %v2561_v20, %v1793_v19 }
  0x33   :  { %367 = vmatpush.bf16.msra.mxu2 %v1850_v58  ;;  %380 = vmatpush.bf16.msra.mxu3 %v1854_v62  ;;  %v2560_v26 = vld [vmem:[#allocation5 + $0xc] sm:$0xf]  ;;  %v1803_v27 = vld [vmem:[#allocation5 + $0x18] sm:$0xf0]  ;;  %v1798_v29 = vor.u32 %v2559_v21, %v1795_v23  ;;  %v1802_v30 = vor.u32 %v2562_v25, %v1801_v24  ;;  %v3053_v33 = vld [vmem:[#allocation7] sm:$0xf] }
  0x34   :  { %v1806_v31 = vor.u32 %v2560_v26, %v1803_v27  ;;  %v134_v32 = vld [vmem:[#allocation2] sm:$0xf]  ;;  %v169_v34 = vperm.slane %v3053_v33, 0  ;;  %v170_v35 = vperm.slane %v3053_v33, 1  ;;  %v2033_v36 = vld [vmem:[#allocation11 + $0xe0] sm:$0xf] }
  0x35   :  { %342 = vmatpush.bf16.msra.mxu0 %v1826_v4  ;;  %v2621_v37 = vld [vmem:[#allocation11 + $0xec] sm:$0xf0]  ;;  %v2161_v38 = vld [vmem:[#allocation11 + $0x1e0] sm:$0xf]  ;;  %v171_v24 = vperm.slane %v3053_v33, 2  ;;  %v172_v25 = vperm.slane %v3053_v33, 3 }
  0x36   :  { %355 = vmatpush.bf16.msra.mxu1 %v1830_v5  ;;  %v2034_v39 = vor.u32 %v2621_v37, %v2033_v36  ;;  %v2653_v40 = vld [vmem:[#allocation11 + $0x1ec] sm:$0xf0]  ;;  %v2289_v41 = vld [vmem:[#allocation11 + $0x2e0] sm:$0xf]  ;;  %s2981_s23 = smov [#allocation14]   ;;  %s1778_s26 = sshll.u32 %s3139_s9, 4  ;;  %s1779_s26 = int_to_ptr.hbm [resolvable:$true] %s1778_s26 }
  0x37   :  { %368 = vmatpush.bf16.msra.mxu2 %v1834_v6  ;;  %381 = vmatpush.bf16.msra.mxu3 %v1838_v10  ;;  %v2685_v42 = vld [vmem:[#allocation11 + $0x2ec] sm:$0xf0]  ;;  %v2162_v43 = vor.u32 %v2653_v40, %v2161_v38  ;;  %v2417_v45 = vld [vmem:[#allocation11 + $0x3e0] sm:$0xf]  ;;  %s1776_s1 = sshll.u32 %s2981_s23, 4  ;;  %s1777_s1 = int_to_ptr.vmem [resolvable:$true] %s1776_s1 }
  0x38   :  { %v2290_v44 = vor.u32 %v2685_v42, %v2289_v41  ;;  %v2717_v46 = vld [vmem:[#allocation11 + $0x3ec] sm:$0xf0]  ;;  %v2017_v47 = vld [vmem:[#allocation11 + $0xc0] sm:$0xf] }
  0x39   :  { %343 = vmatpush.bf16.msra.mxu0 %v1810_v16  ;;  %v2418_v48 = vor.u32 %v2717_v46, %v2417_v45  ;;  %v2617_v49 = vld [vmem:[#allocation11 + $0xcc] sm:$0xf0]  ;;  %v2145_v50 = vld [vmem:[#allocation11 + $0x1c0] sm:$0xf] }
  0x3a   :  { %356 = vmatpush.bf16.msra.mxu1 %v1814_v17  ;;  %v2649_v51 = vld [vmem:[#allocation11 + $0x1cc] sm:$0xf0]  ;;  %v2018_v52 = vor.u32 %v2617_v49, %v2017_v47  ;;  %v2273_v54 = vld [vmem:[#allocation11 + $0x2c0] sm:$0xf] }
  0x3b   :  { %369 = vmatpush.bf16.msra.mxu2 %v1818_v18  ;;  %382 = vmatpush.bf16.msra.mxu3 %v1822_v22  ;;  %v2146_v53 = vor.u32 %v2649_v51, %v2145_v50  ;;  %v2681_v55 = vld [vmem:[#allocation11 + $0x2cc] sm:$0xf0]  ;;  %v2401_v56 = vld [vmem:[#allocation11 + $0x3c0] sm:$0xf] }
  0x3c   :  { %v2274_v57 = vor.u32 %v2681_v55, %v2273_v54  ;;  %v2713_v58 = vld [vmem:[#allocation11 + $0x3cc] sm:$0xf0]  ;;  %v2001_v59 = vld [vmem:[#allocation11 + $0xa0] sm:$0xf] }
  0x3d   :  { %344 = vmatpush.bf16.msra.mxu0 %v1794_v28  ;;  %v2613_v60 = vld [vmem:[#allocation11 + $0xac] sm:$0xf0]  ;;  %v2402_v61 = vor.u32 %v2713_v58, %v2401_v56  ;;  %v2129_v62 = vld [vmem:[#allocation11 + $0x1a0] sm:$0xf] }
  0x3e   :  { %357 = vmatpush.bf16.msra.mxu1 %v1798_v29  ;;  %v2645_v63 = vld [vmem:[#allocation11 + $0x1ac] sm:$0xf0]  ;;  %v2257_v0 = vld [vmem:[#allocation11 + $0x2a0] sm:$0xf]  ;;  %v2002_v1 = vor.u32 %v2613_v60, %v2001_v59 }
  0x3f   :  { %370 = vmatpush.bf16.msra.mxu2 %v1802_v30  ;;  %383 = vmatpush.bf16.msra.mxu3 %v1806_v31  ;;  %v2677_v2 = vld [vmem:[#allocation11 + $0x2ac] sm:$0xf0]  ;;  %v2385_v3 = vld [vmem:[#allocation11 + $0x3a0] sm:$0xf]  ;;  %v2130_v5 = vor.u32 %v2645_v63, %v2129_v62 }
  0x40   :  { %345 = vmatmul.bf16.vlgmr.msra.gmra.mxu0 %v134_v32  ;;  %v2709_v4 = vld [vmem:[#allocation11 + $0x3ac] sm:$0xf0]  ;;  %v2258_v6 = vor.u32 %v2677_v2, %v2257_v0  ;;  %v1985_v7 = vld [vmem:[#allocation11 + $0x80] sm:$0xf] }
  0x41   :  { %358 = vmatmul.bf16.vlgmr.msra.gmra.mxu1 %v134_v32  ;;  %1241 = vmatpush.bf16.msrb.mxu0 %v2034_v39  ;;  %v2609_v8 = vld [vmem:[#allocation11 + $0x8c] sm:$0xf0]  ;;  %v2113_v9 = vld [vmem:[#allocation11 + $0x180] sm:$0xf]  ;;  %v2386_v10 = vor.u32 %v2709_v4, %v2385_v3 }
  0x42   :  { %371 = vmatmul.bf16.vlgmr.msra.gmra.mxu2 %v134_v32  ;;  %384 = vmatmul.bf16.vlgmr.msra.gmra.mxu3 %v134_v32  ;;  %v2641_v11 = vld [vmem:[#allocation11 + $0x18c] sm:$0xf0]  ;;  %v2241_v12 = vld [vmem:[#allocation11 + $0x280] sm:$0xf]  ;;  %v1986_v18 = vor.u32 %v2609_v8, %v1985_v7 }
  0x43   :  { %1254 = vmatpush.bf16.msrb.mxu1 %v2162_v43  ;;  %1267 = vmatpush.bf16.msrb.mxu2 %v2290_v44  ;;  %v2673_v13 = vld [vmem:[#allocation11 + $0x28c] sm:$0xf0]  ;;  %v2369_v15 = vld [vmem:[#allocation11 + $0x380] sm:$0xf]  ;;  %v2114_v19 = vor.u32 %v2641_v11, %v2113_v9 }
  0x44   :  { %1280 = vmatpush.bf16.msrb.mxu3 %v2418_v48  ;;  %v2705_v16 = vld [vmem:[#allocation11 + $0x38c] sm:$0xf0]  ;;  %v2242_v22 = vor.u32 %v2673_v13, %v2241_v12  ;;  %v1969_v44 = vld [vmem:[#allocation11 + $0x60] sm:$0xf] }
  0x45   :  { %1242 = vmatpush.bf16.msrb.mxu0 %v2018_v52  ;;  %v2370_v23 = vor.u32 %v2705_v16, %v2369_v15  ;;  %v2605_v45 = vld [vmem:[#allocation11 + $0x6c] sm:$0xf0]  ;;  %v2097_v46 = vld [vmem:[#allocation11 + $0x160] sm:$0xf] }
  0x46   :  { %v1970_v47 = vor.u32 %v2605_v45, %v1969_v44  ;;  %v2637_v48 = vld [vmem:[#allocation11 + $0x16c] sm:$0xf0]  ;;  %v2225_v49 = vld [vmem:[#allocation11 + $0x260] sm:$0xf]  ;;  %v2019_v44 = vld [vmem:[#allocation11 + $0xd0] sm:$0xf0] }
  0x47   :  { %1255 = vmatpush.bf16.msrb.mxu1 %v2146_v53  ;;  %1268 = vmatpush.bf16.msrb.mxu2 %v2274_v57  ;;  %v2669_v50 = vld [vmem:[#allocation11 + $0x26c] sm:$0xf0]  ;;  %v2098_v51 = vor.u32 %v2637_v48, %v2097_v46  ;;  %v2353_v53 = vld [vmem:[#allocation11 + $0x360] sm:$0xf]  ;;  %v2147_v48 = vld [vmem:[#allocation11 + $0x1d0] sm:$0xf0] }
  0x48   :  { %1281 = vmatpush.bf16.msrb.mxu3 %v2402_v61  ;;  %v2226_v52 = vor.u32 %v2669_v50, %v2225_v49  ;;  %v2701_v54 = vld [vmem:[#allocation11 + $0x36c] sm:$0xf0]  ;;  %v1953_v55 = vld [vmem:[#allocation11 + $0x40] sm:$0xf]  ;;  %v2679_v49 = vld [vmem:[#allocation11 + $0x2c4] sm:$0xf] }
  0x49   :  { %1243 = vmatpush.bf16.msrb.mxu0 %v2002_v1  ;;  %v2354_v56 = vor.u32 %v2701_v54, %v2353_v53  ;;  %v2601_v57 = vld [vmem:[#allocation11 + $0x4c] sm:$0xf0]  ;;  %v2081_v58 = vld [vmem:[#allocation11 + $0x140] sm:$0xf]  ;;  %v2403_v53 = vld [vmem:[#allocation11 + $0x3d0] sm:$0xf0] }
  0x4a   :  { %v2633_v59 = vld [vmem:[#allocation11 + $0x14c] sm:$0xf0]  ;;  %v1954_v60 = vor.u32 %v2601_v57, %v1953_v55  ;;  %v2209_v62 = vld [vmem:[#allocation11 + $0x240] sm:$0xf]  ;;  %v2003_v57 = vld [vmem:[#allocation11 + $0xb0] sm:$0xf0] }
  0x4b   :  { %1256 = vmatpush.bf16.msrb.mxu1 %v2130_v5  ;;  %1269 = vmatpush.bf16.msrb.mxu2 %v2258_v6  ;;  %v2082_v61 = vor.u32 %v2633_v59, %v2081_v58  ;;  %v2665_v63 = vld [vmem:[#allocation11 + $0x24c] sm:$0xf0]  ;;  %v2337_v0 = vld [vmem:[#allocation11 + $0x340] sm:$0xf]  ;;  %v2643_v58 = vld [vmem:[#allocation11 + $0x1a4] sm:$0xf] }
  0x4c   :  { %1282 = vmatpush.bf16.msrb.mxu3 %v2386_v10  ;;  %v2210_v1 = vor.u32 %v2665_v63, %v2209_v62  ;;  %v2697_v2 = vld [vmem:[#allocation11 + $0x34c] sm:$0xf0]  ;;  %v1937_v4 = vld [vmem:[#allocation11 + $0x20] sm:$0xf]  ;;  %v2259_v62 = vld [vmem:[#allocation11 + $0x2b0] sm:$0xf0] }
  0x4d   :  { %1244 = vmatpush.bf16.msrb.mxu0 %v1986_v18  ;;  %v2338_v3 = vor.u32 %v2697_v2, %v2337_v0  ;;  %v2597_v5 = vld [vmem:[#allocation11 + $0x2c] sm:$0xf0]  ;;  %v2065_v6 = vld [vmem:[#allocation11 + $0x120] sm:$0xf]  ;;  %v2387_v2 = vld [vmem:[#allocation11 + $0x3b0] sm:$0xf0] }
  0x4e   :  { %v1938_v7 = vor.u32 %v2597_v5, %v1937_v4  ;;  %v2629_v8 = vld [vmem:[#allocation11 + $0x12c] sm:$0xf0]  ;;  %v2193_v9 = vld [vmem:[#allocation11 + $0x220] sm:$0xf]  ;;  %v2607_v4 = vld [vmem:[#allocation11 + $0x84] sm:$0xf] }
  0x4f   :  { %1257 = vmatpush.bf16.msrb.mxu1 %v2114_v19  ;;  %1270 = vmatpush.bf16.msrb.mxu2 %v2242_v22  ;;  %v2661_v10 = vld [vmem:[#allocation11 + $0x22c] sm:$0xf0]  ;;  %v2066_v11 = vor.u32 %v2629_v8, %v2065_v6  ;;  %v2321_v13 = vld [vmem:[#allocation11 + $0x320] sm:$0xf]  ;;  %v1987_v5 = vld [vmem:[#allocation11 + $0x90] sm:$0xf0] }
  0x50   :  { %1283 = vmatpush.bf16.msrb.mxu3 %v2370_v23  ;;  %v2194_v12 = vor.u32 %v2661_v10, %v2193_v9  ;;  %v1921_v16 = vld [vmem:[#allocation11] sm:$0xf]  ;;  %v2625_v22 = vld [vmem:[#allocation11 + $0x10c] sm:$0xf0]  ;;  %v2639_v6 = vld [vmem:[#allocation11 + $0x184] sm:$0xf] }
  0x51   :  { %1245 = vmatpush.bf16.msrb.mxu0 %v1970_v47  ;;  %v2049_v18 = vld [vmem:[#allocation11 + $0x100] sm:$0xf]  ;;  %v2647_v47 = vld [vmem:[#allocation11 + $0x1c4] sm:$0xf]  ;;  %v2115_v8 = vld [vmem:[#allocation11 + $0x190] sm:$0xf0] }
  0x52   :  { %v2177_v23 = vld [vmem:[#allocation11 + $0x200] sm:$0xf]  ;;  %v2150_v50 = vor.u32 %v2647_v47, %v2147_v48  ;;  %v2671_v9 = vld [vmem:[#allocation11 + $0x284] sm:$0xf]  ;;  %v2243_v10 = vld [vmem:[#allocation11 + $0x290] sm:$0xf0] }
  0x53   :  { %1258 = vmatpush.bf16.msrb.mxu1 %v2098_v51  ;;  %1271 = vmatpush.bf16.msrb.mxu2 %v2226_v52  ;;  %v2275_v51 = vld [vmem:[#allocation11 + $0x2d0] sm:$0xf0]  ;;  %v2711_v52 = vld [vmem:[#allocation11 + $0x3c4] sm:$0xf] }
  0x54   :  { %1284 = vmatpush.bf16.msrb.mxu3 %v2354_v56  ;;  %v2278_v54 = vor.u32 %v2679_v49, %v2275_v51  ;;  %v2406_v55 = vor.u32 %v2711_v52, %v2403_v53  ;;  %v2611_v56 = vld [vmem:[#allocation11 + $0xa4] sm:$0xf]  ;;  %v1939_v47 = vld [vmem:[#allocation11 + $0x30] sm:$0xf0] }
  0x55   :  { %1246 = vmatpush.bf16.msrb.mxu0 %v1954_v60  ;;  %v2006_v59 = vor.u32 %v2611_v56, %v2003_v57  ;;  %v2131_v60 = vld [vmem:[#allocation11 + $0x1b0] sm:$0xf0]  ;;  %v2627_v48 = vld [vmem:[#allocation11 + $0x124] sm:$0xf] }
  0x56   :  { %v2134_v63 = vor.u32 %v2643_v58, %v2131_v60  ;;  %v2067_v49 = vld [vmem:[#allocation11 + $0x130] sm:$0xf0]  ;;  %v2691_v52 = vld [vmem:[#allocation11 + $0x324] sm:$0xf] }
  0x57   :  { %1259 = vmatpush.bf16.msrb.mxu1 %v2082_v61  ;;  %1272 = vmatpush.bf16.msrb.mxu2 %v2210_v1  ;;  %v2675_v61 = vld [vmem:[#allocation11 + $0x2a4] sm:$0xf]  ;;  %v2195_v51 = vld [vmem:[#allocation11 + $0x230] sm:$0xf0]  ;;  %v2070_v57 = vor.u32 %v2627_v48, %v2067_v49  ;;  %v2654_v48 = vld [vmem:[#allocation11 + $0x1f4] sm:$0xf0] }
  0x58   :  { %1285 = vmatpush.bf16.msrb.mxu3 %v2338_v3  ;;  %v2262_v0 = vor.u32 %v2675_v61, %v2259_v62  ;;  %v2707_v1 = vld [vmem:[#allocation11 + $0x3a4] sm:$0xf]  ;;  %v2051_v61 = vld [vmem:[#allocation11 + $0x110] sm:$0xf0]  ;;  %v2297_v49 = vld [vmem:[#allocation11 + $0x2e8] sm:$0xf] }
  0x59   :  { %1247 = vmatpush.bf16.msrb.mxu0 %v1938_v7  ;;  %v2390_v3 = vor.u32 %v2707_v1, %v2387_v2  ;;  %v1990_v7 = vor.u32 %v2607_v4, %v1987_v5  ;;  %v2623_v60 = vld [vmem:[#allocation11 + $0x104] sm:$0xf]  ;;  %v2179_v2 = vld [vmem:[#allocation11 + $0x210] sm:$0xf0] }
  0x5a   :  { %v2655_v1 = vld [vmem:[#allocation11 + $0x204] sm:$0xf]  ;;  %v2307_v4 = vld [vmem:[#allocation11 + $0x310] sm:$0xf0] }
  0x5b   :  { %1260 = vmatpush.bf16.msrb.mxu1 %v2066_v11  ;;  %1273 = vmatpush.bf16.msrb.mxu2 %v2194_v12  ;;  %v2118_v11 = vor.u32 %v2639_v6, %v2115_v8  ;;  %v2246_v12 = vor.u32 %v2671_v9, %v2243_v10  ;;  %v2182_v8 = vor.u32 %v2655_v1, %v2179_v2 }
  0xbd   :  { %v346_v14 = vpop.f32.mrf.mxu0 }
  0xbe   :  { %v359_v17 = vpop.f32.mrf.mxu1  ;;  %v3057_v20 = vadd.f32 %v346_v14, %v169_v34  ;;  %v2693_v14 = vld [vmem:[#allocation11 + $0x32c] sm:$0xf0] }
  0xbf   :  { %v3059_v21 = vadd.f32 %v359_v17, %v170_v35  ;;  %v2322_v15 = vor.u32 %v2693_v14, %v2321_v13  ;;  %v2593_v17 = vld [vmem:[#allocation11 + $0xc] sm:$0xf0]  ;;  %v2703_v13 = vld [vmem:[#allocation11 + $0x384] sm:$0xf]  ;;  %v2371_v14 = vld [vmem:[#allocation11 + $0x390] sm:$0xf0] }
  0xc0   :  { %v394_v28 = vmul.f32 %v3057_v20, %v3057_v20  ;;  %v1922_v19 = vor.u32 %v2593_v17, %v1921_v16  ;;  %v2603_v16 = vld [vmem:[#allocation11 + $0x64] sm:$0xf]  ;;  %v1971_v17 = vld [vmem:[#allocation11 + $0x70] sm:$0xf0] }
  0xc1   :  { %v389_v26 = vadd.f32 %v3059_v21, %v3057_v20  ;;  %v395_v29 = vmul.f32 %v3059_v21, %v3059_v21  ;;  %1286 = vmatpush.bf16.msrb.mxu3 %v2322_v15  ;;  %v2374_v15 = vor.u32 %v2703_v13, %v2371_v14 }
  0xc2   :  { %1248 = vmatpush.bf16.msrb.mxu0 %v1922_v19  ;;  %v1974_v19 = vor.u32 %v2603_v16, %v1971_v17  ;;  %v427_v16 = vld [vmem:[#allocation8] sm:$0xf] }
  0xc3   :  { %v398_v38 = vadd.f32 %v395_v29, %v394_v28  ;;  %v2689_v28 = vld [vmem:[#allocation11 + $0x30c] sm:$0xf0]  ;;  %v2619_v29 = vld [vmem:[#allocation11 + $0xe4] sm:$0xf] }
  0xc5   :  { %v372_v27 = vpop.f32.mrf.mxu2  ;;  %v385_v31 = vpop.f32.mrf.mxu3 }
  0xc6   :  { %v3069_v30 = vadd.f32 %v372_v27, %v171_v24  ;;  %v348_v32 = vpop.f32.mrf.mxu0  ;;  %v3071_v34 = vadd.f32 %v385_v31, %v172_v25  ;;  %v361_v33 = vpop.f32.mrf.mxu1  ;;  %v2657_v24 = vld [vmem:[#allocation11 + $0x20c] sm:$0xf0]  ;;  %v2050_v25 = vor.u32 %v2625_v22, %v2049_v18  ;;  %v2305_v27 = vld [vmem:[#allocation11 + $0x300] sm:$0xf]  ;;  %v2635_v18 = vld [vmem:[#allocation11 + $0x164] sm:$0xf] }
  0xc7   :  { %v2306_v31 = vor.u32 %v2689_v28, %v2305_v27  ;;  %v2035_v32 = vld [vmem:[#allocation11 + $0xf0] sm:$0xf0]  ;;  %v2651_v33 = vld [vmem:[#allocation11 + $0x1e4] sm:$0xf] }
  0xc8   :  { %v390_v35 = vadd.f32 %v389_v26, %v3069_v30  ;;  %v396_v36 = vmul.f32 %v3069_v30, %v3069_v30  ;;  %v397_v41 = vmul.f32 %v3071_v34, %v3071_v34  ;;  %v2178_v26 = vor.u32 %v2657_v24, %v2177_v23  ;;  %1261 = vmatpush.bf16.msrb.mxu1 %v2050_v25  ;;  %v2099_v22 = vld [vmem:[#allocation11 + $0x170] sm:$0xf0]  ;;  %v2667_v23 = vld [vmem:[#allocation11 + $0x264] sm:$0xf] }
  0xc9   :  { %1287 = vmatpush.bf16.msrb.mxu3 %v2306_v31  ;;  %v2227_v24 = vld [vmem:[#allocation11 + $0x270] sm:$0xf0]  ;;  %v2699_v28 = vld [vmem:[#allocation11 + $0x364] sm:$0xf] }
  0xca   :  { %v391_v37 = vadd.f32 %v390_v35, %v3071_v34  ;;  %v399_v42 = vadd.f32 %v398_v38, %v396_v36  ;;  %v2163_v35 = vld [vmem:[#allocation11 + $0x1f0] sm:$0xf0]  ;;  %1274 = vmatpush.bf16.msrb.mxu2 %v2178_v26  ;;  %v2038_v36 = vor.u32 %v2619_v29, %v2035_v32  ;;  %v2683_v38 = vld [vmem:[#allocation11 + $0x2e4] sm:$0xf]  ;;  %v2102_v26 = vor.u32 %v2635_v18, %v2099_v22  ;;  %v441_v18 = vld [vmem:[#allocation10] sm:$0xf] }
  0xcb   :  { %v2230_v27 = vor.u32 %v2667_v23, %v2227_v24  ;;  %v2355_v29 = vld [vmem:[#allocation11 + $0x370] sm:$0xf0] }
  0xcc   :  { %392 = vadd.xlane.f32.xlu0 %v391_v37  ;;  %v400_v43 = vadd.f32 %v399_v42, %v397_v41  ;;  %v2166_v37 = vor.u32 %v2651_v33, %v2163_v35  ;;  %v2419_v42 = vld [vmem:[#allocation11 + $0x3f0] sm:$0xf0]  ;;  %1293 = vmatpush.bf16.msra.mxu0 %v2038_v36  ;;  %v2358_v32 = vor.u32 %v2699_v28, %v2355_v29  ;;  %v2599_v33 = vld [vmem:[#allocation11 + $0x44] sm:$0xf]  ;;  %v430_v28 = vperm.slane %v427_v16, 1 }
  0xcd   :  { %v374_v39 = vpop.f32.mrf.mxu2  ;;  %v387_v40 = vpop.f32.mrf.mxu3  ;;  %v1955_v35 = vld [vmem:[#allocation11 + $0x50] sm:$0xf0]  ;;  %v2631_v36 = vld [vmem:[#allocation11 + $0x144] sm:$0xf]  ;;  %v431_v29 = vperm.slane %v427_v16, 2 }
  0xce   :  { %v2291_v39 = vld [vmem:[#allocation11 + $0x2f0] sm:$0xf0]  ;;  %v2715_v40 = vld [vmem:[#allocation11 + $0x3e4] sm:$0xf]  ;;  %1306 = vmatpush.bf16.msra.mxu1 %v2166_v37 }
  0xcf   :  { %v2294_v41 = vor.u32 %v2683_v38, %v2291_v39  ;;  %v2422_v45 = vor.u32 %v2715_v40, %v2419_v42  ;;  %v2083_v37 = vld [vmem:[#allocation11 + $0x150] sm:$0xf0]  ;;  %v2663_v38 = vld [vmem:[#allocation11 + $0x244] sm:$0xf]  ;;  %v1958_v40 = vor.u32 %v2599_v33, %v1955_v35  ;;  %v444_v35 = vperm.slane %v441_v18, 1 }
  0xd0   :  { %v2211_v39 = vld [vmem:[#allocation11 + $0x250] sm:$0xf0]  ;;  %v2695_v42 = vld [vmem:[#allocation11 + $0x344] sm:$0xf] }
  0xd1   :  { %1319 = vmatpush.bf16.msra.mxu2 %v2294_v41  ;;  %1332 = vmatpush.bf16.msra.mxu3 %v2422_v45  ;;  %v2086_v41 = vor.u32 %v2631_v36, %v2083_v37  ;;  %v2214_v45 = vor.u32 %v2663_v38, %v2211_v39  ;;  %v446_v36 = vperm.slane %v441_v18, 3 }
  0xd2   :  { %1307 = vmatpush.bf16.msra.mxu1 %v2150_v50  ;;  %v2659_v50 = vld [vmem:[#allocation11 + $0x224] sm:$0xf] }
  0xd3   :  { %v2198_v58 = vor.u32 %v2659_v50, %v2195_v51  ;;  %v2686_v50 = vld [vmem:[#allocation11 + $0x2f4] sm:$0xf0]  ;;  %v2425_v51 = vld [vmem:[#allocation11 + $0x3e8] sm:$0xf] }
  0xd4   :  { %401 = vadd.xlane.f32.xlu0 %v400_v43  ;;  %v2615_v43 = vld [vmem:[#allocation11 + $0xc4] sm:$0xf]  ;;  %v2298_v1 = vor.u32 %v2686_v50, %v2297_v49 }
  0xd5   :  { %v2022_v46 = vor.u32 %v2615_v43, %v2019_v44  ;;  %1320 = vmatpush.bf16.msra.mxu2 %v2278_v54  ;;  %1333 = vmatpush.bf16.msra.mxu3 %v2406_v55  ;;  %v2339_v43 = vld [vmem:[#allocation11 + $0x350] sm:$0xf0]  ;;  %v2595_v44 = vld [vmem:[#allocation11 + $0x24] sm:$0xf] }
  0xd6   :  { %1308 = vmatpush.bf16.msra.mxu1 %v2134_v63  ;;  %v1942_v53 = vor.u32 %v2595_v44, %v1939_v47  ;;  %v2323_v54 = vld [vmem:[#allocation11 + $0x330] sm:$0xf0]  ;;  %v2591_v55 = vld [vmem:[#allocation11 + $0x4] sm:$0xf]  ;;  %v2169_v47 = vld [vmem:[#allocation11 + $0x1e8] sm:$0xf] }
  0xd7   :  { %1294 = vmatpush.bf16.msra.mxu0 %v2022_v46  ;;  %v2342_v46 = vor.u32 %v2695_v42, %v2339_v43 }
  0xd9   :  { %1321 = vmatpush.bf16.msra.mxu2 %v2262_v0  ;;  %1334 = vmatpush.bf16.msra.mxu3 %v2390_v3  ;;  %v2326_v0 = vor.u32 %v2691_v52, %v2323_v54  ;;  %v2687_v3 = vld [vmem:[#allocation11 + $0x304] sm:$0xf] }
  0xda   :  { %1309 = vmatpush.bf16.msra.mxu1 %v2118_v11  ;;  %v2310_v10 = vor.u32 %v2687_v3, %v2307_v4  ;;  %v2153_v3 = vld [vmem:[#allocation11 + $0x1c8] sm:$0xf]  ;;  %v2650_v4 = vld [vmem:[#allocation11 + $0x1d4] sm:$0xf0] }
  0xdb   :  { %1295 = vmatpush.bf16.msra.mxu0 %v2006_v59  ;;  %v1923_v59 = vld [vmem:[#allocation11 + $0x10] sm:$0xf0] }
  0xdc   :  { %v1926_v6 = vor.u32 %v2591_v55, %v1923_v59 }
  0xdd   :  { %1322 = vmatpush.bf16.msra.mxu2 %v2246_v12  ;;  %1335 = vmatpush.bf16.msra.mxu3 %v2374_v15 }
  0xde   :  { %1310 = vmatpush.bf16.msra.mxu1 %v2102_v26  ;;  %v429_v26 = vperm.slane %v427_v16, 0 }
  0xdf   :  { %1296 = vmatpush.bf16.msra.mxu0 %v1990_v7  ;;  %v2054_v7 = vor.u32 %v2623_v60, %v2051_v61 }
  0xe1   :  { %1323 = vmatpush.bf16.msra.mxu2 %v2230_v27  ;;  %1336 = vmatpush.bf16.msra.mxu3 %v2358_v32  ;;  %v443_v27 = vperm.slane %v441_v18, 0  ;;  %v432_v32 = vperm.slane %v427_v16, 3  ;;  %v2646_v16 = vld [vmem:[#allocation11 + $0x1b4] sm:$0xf0] }
  0xe2   :  { %1311 = vmatpush.bf16.msra.mxu1 %v2086_v41 }
  0xe3   :  { %1297 = vmatpush.bf16.msra.mxu0 %v1974_v19 }
  0xe5   :  { %1324 = vmatpush.bf16.msra.mxu2 %v2214_v45  ;;  %1337 = vmatpush.bf16.msra.mxu3 %v2342_v46  ;;  %v2622_v46 = vld [vmem:[#allocation11 + $0xf4] sm:$0xf0] }
  0xe6   :  { %1312 = vmatpush.bf16.msra.mxu1 %v2070_v57 }
  0xe7   :  { %1298 = vmatpush.bf16.msra.mxu0 %v1958_v40 }
  0xe9   :  { %1325 = vmatpush.bf16.msra.mxu2 %v2198_v58  ;;  %1338 = vmatpush.bf16.msra.mxu3 %v2326_v0  ;;  %v2170_v58 = vor.u32 %v2654_v48, %v2169_v47  ;;  %v2618_v0 = vld [vmem:[#allocation11 + $0xd4] sm:$0xf0]  ;;  %v1961_v47 = vld [vmem:[#allocation11 + $0x48] sm:$0xf] }
  0xea   :  { %1313 = vmatpush.bf16.msra.mxu1 %v2054_v7  ;;  %v2409_v7 = vld [vmem:[#allocation11 + $0x3c8] sm:$0xf]  ;;  %v2602_v48 = vld [vmem:[#allocation11 + $0x54] sm:$0xf0] }
  0xeb   :  { %1299 = vmatpush.bf16.msra.mxu0 %v1942_v53 }
  0xed   :  { %1326 = vmatpush.bf16.msra.mxu2 %v2182_v8  ;;  %1339 = vmatpush.bf16.msra.mxu3 %v2310_v10  ;;  %v2714_v8 = vld [vmem:[#allocation11 + $0x3d4] sm:$0xf0]  ;;  %v2154_v10 = vor.u32 %v2650_v4, %v2153_v3  ;;  %v2073_v3 = vld [vmem:[#allocation11 + $0x128] sm:$0xf] }
  0xee   :  { %v2630_v4 = vld [vmem:[#allocation11 + $0x134] sm:$0xf0] }
  0xef   :  { %1300 = vmatpush.bf16.msra.mxu0 %v1926_v6  ;;  %v2682_v6 = vld [vmem:[#allocation11 + $0x2d4] sm:$0xf0] }
 0x13f   :  { %v393_v25 = vpop.xlane.xlu0 %392 }
 0x140   :  { %v3079_v31 = vmul.f32 0.0025, %v393_v25 }
 0x142   :  { %v405_v62 = vmul.f32 %v3079_v31, %v3079_v31  ;;  %v408_v19 = vsub.f32 %v3057_v20, %v3079_v31  ;;  %v409_v22 = vsub.f32 %v3059_v21, %v3079_v31  ;;  %v410_v23 = vsub.f32 %v3069_v30, %v3079_v31 }
 0x143   :  { %v411_v24 = vsub.f32 %v3071_v34, %v3079_v31  ;;  %v445_v20 = vperm.slane %v441_v18, 2  ;;  %v2041_v31 = vld [vmem:[#allocation11 + $0xe8] sm:$0xf]  ;;  %v2678_v18 = vld [vmem:[#allocation11 + $0x2b4] sm:$0xf0] }
 0x144   :  { %v2042_v57 = vor.u32 %v2622_v46, %v2041_v31  ;;  %v2233_v31 = vld [vmem:[#allocation11 + $0x268] sm:$0xf] }
 0x147   :  { %v402_v56 = vpop.xlane.xlu0 %401 }
 0x148   :  { %v404_v63 = vmul.f32 0.0025, %v402_v56  ;;  %v2718_v56 = vld [vmem:[#allocation11 + $0x3f4] sm:$0xf0] }
 0x149   :  { %v2426_v2 = vor.u32 %v2718_v56, %v2425_v51  ;;  %v2089_v51 = vld [vmem:[#allocation11 + $0x148] sm:$0xf]  ;;  %v2698_v56 = vld [vmem:[#allocation11 + $0x354] sm:$0xf0] }
 0x14a   :  { %v406_v5 = vsub.f32 %v404_v63, %v405_v62  ;;  %v2025_v63 = vld [vmem:[#allocation11 + $0xc8] sm:$0xf] }
 0x14c   :  { %v407_v9 = vmax.f32 %v406_v5, 0.0  ;;  %v2281_v5 = vld [vmem:[#allocation11 + $0x2c8] sm:$0xf] }
 0x14e   :  { %v412_v11 = vadd.f32 1e-05, %v407_v9  ;;  %v2026_v9 = vor.u32 %v2618_v0, %v2025_v63  ;;  %v1945_v63 = vld [vmem:[#allocation11 + $0x28] sm:$0xf]  ;;  %v2598_v0 = vld [vmem:[#allocation11 + $0x34] sm:$0xf0] }
 0x150   :  { %2764 = vrsqrt.f32 %v412_v11  ;;  %vm419_vm1 = vweird.f32 %v412_v11 }
 0x156   :  { %v2765_v12 = vpop.eup %2764 }
 0x157   :  { %v414_v13 = vmul.f32 %v2765_v12, %v412_v11  ;;  %vm420_vm0 = vweird.f32 %v2765_v12  ;;  %v2009_v11 = vld [vmem:[#allocation11 + $0xa8] sm:$0xf] }
 0x158   :  { %vm421_vm2 = vmor %vm419_vm1, %vm420_vm0 }
 0x159   :  { %v415_v14 = vmul.f32 %v2765_v12, %v414_v13  ;;  %v2282_v13 = vor.u32 %v2682_v6, %v2281_v5  ;;  %v2201_v5 = vld [vmem:[#allocation11 + $0x228] sm:$0xf]  ;;  %v2662_v6 = vld [vmem:[#allocation11 + $0x234] sm:$0xf0] }
 0x15b   :  { %v416_v15 = vmul.f32 0.5, %v415_v14  ;;  %v2410_v14 = vor.u32 %v2714_v8, %v2409_v7  ;;  %v2329_v7 = vld [vmem:[#allocation11 + $0x328] sm:$0xf]  ;;  %v2694_v8 = vld [vmem:[#allocation11 + $0x334] sm:$0xf0] }
 0x15d   :  { %v417_v17 = vsub.f32 1.5, %v416_v15  ;;  %v2137_v15 = vld [vmem:[#allocation11 + $0x1a8] sm:$0xf] }
 0x15f   :  { %v418_v25 = vmul.f32 %v2765_v12, %v417_v17  ;;  %v2265_v17 = vld [vmem:[#allocation11 + $0x2a8] sm:$0xf] }
 0x161   :  { %v422_v33 = vsel %vm421_vm2, %v2765_v12, %v418_v25  ;;  %v2614_v12 = vld [vmem:[#allocation11 + $0xb4] sm:$0xf0]  ;;  %v1993_v25 = vld [vmem:[#allocation11 + $0x88] sm:$0xf] }
 0x162   :  { %v423_v37 = vmul.f32 %v422_v33, %v408_v19  ;;  %v424_v21 = vmul.f32 %v422_v33, %v409_v22  ;;  %v425_v38 = vmul.f32 %v422_v33, %v410_v23  ;;  %v426_v39 = vmul.f32 %v422_v33, %v411_v24  ;;  %v2393_v19 = vld [vmem:[#allocation11 + $0x3a8] sm:$0xf]  ;;  %v2710_v22 = vld [vmem:[#allocation11 + $0x3b4] sm:$0xf0] }
 0x163   :  { %v2010_v23 = vor.u32 %v2614_v12, %v2009_v11  ;;  %v2138_v24 = vor.u32 %v2646_v16, %v2137_v15  ;;  %v2249_v33 = vld [vmem:[#allocation11 + $0x288] sm:$0xf]  ;;  %v2074_v11 = vor.u32 %v2630_v4, %v2073_v3  ;;  %v2594_v12 = vld [vmem:[#allocation11 + $0x14] sm:$0xf0]  ;;  %v2202_v15 = vor.u32 %v2662_v6, %v2201_v5  ;;  %v2640_v3 = vld [vmem:[#allocation11 + $0x18c] sm:$0xf] }
 0x164   :  { %v437_v30 = vmul.f32 %v429_v26, %v423_v37  ;;  %v438_v40 = vmul.f32 %v430_v28, %v424_v21  ;;  %v439_v41 = vmul.f32 %v431_v29, %v425_v38  ;;  %v440_v34 = vmul.f32 %v432_v32, %v426_v39  ;;  %v2610_v26 = vld [vmem:[#allocation11 + $0x94] sm:$0xf0]  ;;  %v2121_v29 = vld [vmem:[#allocation11 + $0x188] sm:$0xf]  ;;  %v2123_v4 = vld [vmem:[#allocation11 + $0x198] sm:$0xf0] }
 0x165   :  { %v2394_v28 = vor.u32 %v2710_v22, %v2393_v19  ;;  %v2642_v32 = vld [vmem:[#allocation11 + $0x194] sm:$0xf0]  ;;  %v1994_v37 = vor.u32 %v2610_v26, %v1993_v25  ;;  %v1977_v38 = vld [vmem:[#allocation11 + $0x68] sm:$0xf]  ;;  %v2330_v16 = vor.u32 %v2694_v8, %v2329_v7  ;;  %v2652_v25 = vld [vmem:[#allocation11 + $0x1ec] sm:$0xf] }
 0x166   :  { %v451_v42 = vadd.f32 %v443_v27, %v437_v30  ;;  %v452_v43 = vadd.f32 %v444_v35, %v438_v40  ;;  %v453_v44 = vadd.f32 %v445_v20, %v439_v41  ;;  %v454_v45 = vadd.f32 %v446_v36, %v440_v34  ;;  %v2674_v35 = vld [vmem:[#allocation11 + $0x294] sm:$0xf0]  ;;  %v2377_v20 = vld [vmem:[#allocation11 + $0x388] sm:$0xf]  ;;  %v2171_v26 = vld [vmem:[#allocation11 + $0x1f8] sm:$0xf0] }
 0x167   :  { %v2266_v27 = vor.u32 %v2678_v18, %v2265_v17  ;;  %v2706_v36 = vld [vmem:[#allocation11 + $0x394] sm:$0xf0]  ;;  %v2122_v21 = vor.u32 %v2642_v32, %v2121_v29  ;;  %v2250_v30 = vor.u32 %v2674_v35, %v2249_v33  ;;  %v2105_v41 = vld [vmem:[#allocation11 + $0x168] sm:$0xf]  ;;  %v2299_v32 = vld [vmem:[#allocation11 + $0x2f8] sm:$0xf0] }
 0x168   :  { %v455_v52 = vmax.f32 %v451_v42, 0.0  ;;  %v456_v53 = vmax.f32 %v452_v43, 0.0  ;;  %v457_v54 = vmax.f32 %v453_v44, 0.0  ;;  %v458_v55 = vmax.f32 %v454_v45, 0.0  ;;  %v2606_v39 = vld [vmem:[#allocation11 + $0x74] sm:$0xf0] }
 0x169   :  { %v2378_v40 = vor.u32 %v2706_v36, %v2377_v20  ;;  %v2638_v34 = vld [vmem:[#allocation11 + $0x174] sm:$0xf0]  ;;  %v2361_v43 = vld [vmem:[#allocation11 + $0x368] sm:$0xf]  ;;  %v1978_v45 = vor.u32 %v2606_v39, %v1977_v38  ;;  %v2716_v33 = vld [vmem:[#allocation11 + $0x3ec] sm:$0xf] }
 0x16a   :  { %v3091_v59 = vpack.c.bf16 %v455_v52, %v455_v52  ;;  %v3093_v60 = vpack.c.bf16 %v456_v53, %v456_v53  ;;  %v3095_v61 = vpack.c.bf16 %v457_v54, %v457_v54  ;;  %v3097_v62 = vpack.c.bf16 %v458_v55, %v458_v55  ;;  %v2670_v42 = vld [vmem:[#allocation11 + $0x274] sm:$0xf0]  ;;  %v2217_v53 = vld [vmem:[#allocation11 + $0x248] sm:$0xf]  ;;  %v2427_v35 = vld [vmem:[#allocation11 + $0x3f8] sm:$0xf0] }
 0x16b   :  { %v2702_v44 = vld [vmem:[#allocation11 + $0x374] sm:$0xf0]  ;;  %v2106_v46 = vor.u32 %v2638_v34, %v2105_v41  ;;  %v2234_v49 = vor.u32 %v2670_v42, %v2233_v31  ;;  %v2345_v55 = vld [vmem:[#allocation11 + $0x348] sm:$0xf]  ;;  %v2616_v38 = vld [vmem:[#allocation11 + $0xcc] sm:$0xf] }
 0x16c   :  { %1249 = vmatmul.bf16.vlgmr.msrb.gmra.mxu0 %v3091_v59  ;;  %1262 = vmatmul.bf16.vlgmr.msrb.gmra.mxu1 %v3093_v60  ;;  %v2362_v50 = vor.u32 %v2702_v44, %v2361_v43  ;;  %v2634_v52 = vld [vmem:[#allocation11 + $0x154] sm:$0xf0]  ;;  %v2185_v17 = vld [vmem:[#allocation11 + $0x208] sm:$0xf]  ;;  %v2027_v39 = vld [vmem:[#allocation11 + $0xd8] sm:$0xf0] }
 0x16d   :  { %1275 = vmatmul.bf16.vlgmr.msrb.gmra.mxu2 %v3095_v61  ;;  %1288 = vmatmul.bf16.vlgmr.msrb.gmra.mxu3 %v3097_v62  ;;  %v2666_v54 = vld [vmem:[#allocation11 + $0x254] sm:$0xf0]  ;;  %v2313_v19 = vld [vmem:[#allocation11 + $0x308] sm:$0xf]  ;;  %v2648_v41 = vld [vmem:[#allocation11 + $0x1cc] sm:$0xf] }
 0x16e   :  { %1345 = vmatpush.bf16.msrb.mxu0 %v2042_v57  ;;  %1358 = vmatpush.bf16.msrb.mxu1 %v2170_v58  ;;  %v1962_v57 = vor.u32 %v2602_v48, %v1961_v47  ;;  %v2090_v58 = vor.u32 %v2634_v52, %v2089_v51  ;;  %v2658_v18 = vld [vmem:[#allocation11 + $0x214] sm:$0xf0]  ;;  %v2155_v34 = vld [vmem:[#allocation11 + $0x1d8] sm:$0xf0]  ;;  %v2680_v31 = vld [vmem:[#allocation11 + $0x2cc] sm:$0xf] }
 0x16f   :  { %1371 = vmatpush.bf16.msrb.mxu2 %v2298_v1  ;;  %1384 = vmatpush.bf16.msrb.mxu3 %v2426_v2  ;;  %v2218_v1 = vor.u32 %v2666_v54, %v2217_v53  ;;  %v2346_v2 = vor.u32 %v2698_v56, %v2345_v55  ;;  %v2690_v22 = vld [vmem:[#allocation11 + $0x314] sm:$0xf0]  ;;  %v2186_v20 = vor.u32 %v2658_v18, %v2185_v17  ;;  %v2283_v42 = vld [vmem:[#allocation11 + $0x2d8] sm:$0xf0]  ;;  %v2712_v43 = vld [vmem:[#allocation11 + $0x3cc] sm:$0xf] }
 0x170   :  { %v2314_v36 = vor.u32 %v2690_v22, %v2313_v19  ;;  %v2411_v44 = vld [vmem:[#allocation11 + $0x3d8] sm:$0xf0]  ;;  %v2612_v47 = vld [vmem:[#allocation11 + $0xac] sm:$0xf] }
 0x171   :  { %v2011_v48 = vld [vmem:[#allocation11 + $0xb8] sm:$0xf0]  ;;  %v2644_v51 = vld [vmem:[#allocation11 + $0x1ac] sm:$0xf] }
 0x172   :  { %1346 = vmatpush.bf16.msrb.mxu0 %v2026_v9  ;;  %1359 = vmatpush.bf16.msrb.mxu1 %v2154_v10  ;;  %v1929_v9 = vld [vmem:[#allocation11 + $0x8] sm:$0xf]  ;;  %v1946_v10 = vor.u32 %v2598_v0, %v1945_v63  ;;  %v2139_v52 = vld [vmem:[#allocation11 + $0x1b8] sm:$0xf0]  ;;  %v2676_v53 = vld [vmem:[#allocation11 + $0x2ac] sm:$0xf] }
 0x173   :  { %1372 = vmatpush.bf16.msrb.mxu2 %v2282_v13  ;;  %1385 = vmatpush.bf16.msrb.mxu3 %v2410_v14  ;;  %v2057_v13 = vld [vmem:[#allocation11 + $0x108] sm:$0xf]  ;;  %v2626_v14 = vld [vmem:[#allocation11 + $0x114] sm:$0xf0]  ;;  %v2267_v54 = vld [vmem:[#allocation11 + $0x2b8] sm:$0xf0] }
 0x174   :  { %v2058_v29 = vor.u32 %v2626_v14, %v2057_v13  ;;  %v2708_v55 = vld [vmem:[#allocation11 + $0x3ac] sm:$0xf]  ;;  %v2395_v56 = vld [vmem:[#allocation11 + $0x3b8] sm:$0xf0] }
 0x175   :  { %v2608_v63 = vld [vmem:[#allocation11 + $0x8c] sm:$0xf]  ;;  %v1995_v0 = vld [vmem:[#allocation11 + $0x98] sm:$0xf0] }
 0x176   :  { %1347 = vmatpush.bf16.msrb.mxu0 %v2010_v23  ;;  %1360 = vmatpush.bf16.msrb.mxu1 %v2138_v24  ;;  %v2620_v23 = vld [vmem:[#allocation11 + $0xec] sm:$0xf]  ;;  %v2043_v24 = vld [vmem:[#allocation11 + $0xf8] sm:$0xf0] }
 0x177   :  { %1373 = vmatpush.bf16.msrb.mxu2 %v2266_v27  ;;  %1386 = vmatpush.bf16.msrb.mxu3 %v2394_v28  ;;  %v2684_v27 = vld [vmem:[#allocation11 + $0x2ec] sm:$0xf]  ;;  %v1930_v28 = vor.u32 %v2594_v12, %v1929_v9  ;;  %v2251_v6 = vld [vmem:[#allocation11 + $0x298] sm:$0xf0]  ;;  %v1998_v9 = vor.u32 %v2608_v63, %v1995_v0 }
 0x178   :  { %v2672_v5 = vld [vmem:[#allocation11 + $0x28c] sm:$0xf]  ;;  %v2379_v8 = vld [vmem:[#allocation11 + $0x398] sm:$0xf0] }
 0x179   :  { %v2704_v7 = vld [vmem:[#allocation11 + $0x38c] sm:$0xf]  ;;  %v1979_v12 = vld [vmem:[#allocation11 + $0x78] sm:$0xf0]  ;;  %v2254_v13 = vor.u32 %v2672_v5, %v2251_v6 }
 0x17a   :  { %1348 = vmatpush.bf16.msrb.mxu0 %v1994_v37  ;;  %1361 = vmatpush.bf16.msrb.mxu1 %v2122_v21  ;;  %v2046_v37 = vor.u32 %v2620_v23, %v2043_v24  ;;  %v2174_v21 = vor.u32 %v2652_v25, %v2171_v26  ;;  %v2382_v14 = vor.u32 %v2704_v7, %v2379_v8  ;;  %v2668_v17 = vld [vmem:[#allocation11 + $0x26c] sm:$0xf]  ;;  %v2235_v18 = vld [vmem:[#allocation11 + $0x278] sm:$0xf0]  ;;  %v2721_v7 = vld [vmem:[#allocation13 + $0x10] sm:$0xff] }
 0x17b   :  { %1374 = vmatpush.bf16.msrb.mxu2 %v2250_v30  ;;  %1387 = vmatpush.bf16.msrb.mxu3 %v2378_v40  ;;  %v2302_v30 = vor.u32 %v2684_v27, %v2299_v32  ;;  %v2430_v40 = vor.u32 %v2716_v33, %v2427_v35  ;;  %v2700_v19 = vld [vmem:[#allocation11 + $0x36c] sm:$0xf]  ;;  %v2363_v22 = vld [vmem:[#allocation11 + $0x378] sm:$0xf0]  ;;  %v2238_v27 = vor.u32 %v2668_v17, %v2235_v18  ;;  %v2733_v8 = vld [vmem:[#allocation13 + $0x70] sm:$0xff] }
 0x17c   :  { %1301 = vmatmul.bf16.vlgmr.msra.gmra.mxu0 %v3091_v59  ;;  %1314 = vmatmul.bf16.vlgmr.msra.gmra.mxu1 %v3093_v60  ;;  %v2600_v25 = vld [vmem:[#allocation11 + $0x4c] sm:$0xf]  ;;  %v1963_v26 = vld [vmem:[#allocation11 + $0x58] sm:$0xf0]  ;;  %v2727_v17 = vld [vmem:[#allocation13 + $0x40] sm:$0xff] }
 0x17d   :  { %1327 = vmatmul.bf16.vlgmr.msra.gmra.mxu2 %v3095_v61  ;;  %1340 = vmatmul.bf16.vlgmr.msra.gmra.mxu3 %v3097_v62  ;;  %v2091_v32 = vld [vmem:[#allocation11 + $0x158] sm:$0xf0]  ;;  %v2664_v33 = vld [vmem:[#allocation11 + $0x24c] sm:$0xf]  ;;  %v2739_v18 = vld [vmem:[#allocation13 + $0xa0] sm:$0xff] }
 0x17e   :  { %1349 = vmatpush.bf16.msrb.mxu0 %v1978_v45  ;;  %1362 = vmatpush.bf16.msrb.mxu1 %v2106_v46  ;;  %v2030_v45 = vor.u32 %v2616_v38, %v2027_v39  ;;  %v2158_v46 = vor.u32 %v2648_v41, %v2155_v34  ;;  %v2219_v35 = vld [vmem:[#allocation11 + $0x258] sm:$0xf0]  ;;  %v2596_v38 = vld [vmem:[#allocation11 + $0x2c] sm:$0xf] }
 0x17f   :  { %1375 = vmatpush.bf16.msrb.mxu2 %v2234_v49  ;;  %1388 = vmatpush.bf16.msrb.mxu3 %v2362_v50  ;;  %v2286_v49 = vor.u32 %v2680_v31, %v2283_v42  ;;  %v2414_v50 = vor.u32 %v2712_v43, %v2411_v44  ;;  %v1947_v39 = vld [vmem:[#allocation11 + $0x38] sm:$0xf0]  ;;  %v2628_v41 = vld [vmem:[#allocation11 + $0x12c] sm:$0xf] }
 0x180   :  { %v2075_v34 = vld [vmem:[#allocation11 + $0x138] sm:$0xf0]  ;;  %v2660_v31 = vld [vmem:[#allocation11 + $0x22c] sm:$0xf] }
 0x181   :  { %v2203_v42 = vld [vmem:[#allocation11 + $0x238] sm:$0xf0]  ;;  %v2692_v43 = vld [vmem:[#allocation11 + $0x32c] sm:$0xf] }
 0x182   :  { %1350 = vmatpush.bf16.msrb.mxu0 %v1962_v57  ;;  %1363 = vmatpush.bf16.msrb.mxu1 %v2090_v58  ;;  %v2014_v57 = vor.u32 %v2612_v47, %v2011_v48  ;;  %v2142_v58 = vor.u32 %v2644_v51, %v2139_v52  ;;  %v2331_v44 = vld [vmem:[#allocation11 + $0x338] sm:$0xf0]  ;;  %v2592_v47 = vld [vmem:[#allocation11 + $0xc] sm:$0xf] }
 0x183   :  { %1376 = vmatpush.bf16.msrb.mxu2 %v2218_v1  ;;  %1389 = vmatpush.bf16.msrb.mxu3 %v2346_v2  ;;  %v2270_v1 = vor.u32 %v2676_v53, %v2267_v54  ;;  %v2398_v2 = vor.u32 %v2708_v55, %v2395_v56  ;;  %v1931_v48 = vld [vmem:[#allocation11 + $0x18] sm:$0xf0]  ;;  %v2624_v51 = vld [vmem:[#allocation11 + $0x10c] sm:$0xf] }
 0x184   :  { %v2059_v52 = vld [vmem:[#allocation11 + $0x118] sm:$0xf0]  ;;  %v2656_v53 = vld [vmem:[#allocation11 + $0x20c] sm:$0xf] }
 0x185   :  { %v2187_v54 = vld [vmem:[#allocation11 + $0x218] sm:$0xf0]  ;;  %v2688_v55 = vld [vmem:[#allocation11 + $0x30c] sm:$0xf] }
 0x186   :  { %1351 = vmatpush.bf16.msrb.mxu0 %v1946_v10  ;;  %1364 = vmatpush.bf16.msrb.mxu1 %v2074_v11  ;;  %v2126_v10 = vor.u32 %v2640_v3, %v2123_v4  ;;  %v2604_v11 = vld [vmem:[#allocation11 + $0x6c] sm:$0xf]  ;;  %v2315_v56 = vld [vmem:[#allocation11 + $0x318] sm:$0xf0]  ;;  %v2190_v63 = vor.u32 %v2656_v53, %v2187_v54  ;;  %v2723_v4 = vld [vmem:[#allocation13 + $0x20] sm:$0xff] }
 0x187   :  { %1377 = vmatpush.bf16.msrb.mxu2 %v2202_v15  ;;  %1390 = vmatpush.bf16.msrb.mxu3 %v2330_v16  ;;  %v2636_v15 = vld [vmem:[#allocation11 + $0x16c] sm:$0xf]  ;;  %v2107_v16 = vld [vmem:[#allocation11 + $0x178] sm:$0xf0]  ;;  %v1982_v23 = vor.u32 %v2604_v11, %v1979_v12  ;;  %v2318_v0 = vor.u32 %v2688_v55, %v2315_v56  ;;  %v2729_v11 = vld [vmem:[#allocation13 + $0x50] sm:$0xff] }
 0x188   :  { %v2110_v24 = vor.u32 %v2636_v15, %v2107_v16  ;;  %v2724_v3 = vld [vmem:[#allocation13 + $0x28] sm:$0xff]  ;;  %v2722_v5 = vld [vmem:[#allocation13 + $0x18] sm:$0xff]  ;;  %v2741_v12 = vld [vmem:[#allocation13 + $0xb0] sm:$0xff] }
 0x189   :  { %v2734_v6 = vld [vmem:[#allocation13 + $0x78] sm:$0xff]  ;;  %v3118_v15 = vld [vmem:[%s3136_s6] sm:$0xf] }
 0x18a   :  { %1352 = vmatpush.bf16.msrb.mxu0 %v1930_v28  ;;  %1365 = vmatpush.bf16.msrb.mxu1 %v2058_v29  ;;  %v2366_v28 = vor.u32 %v2700_v19, %v2363_v22  ;;  %v2632_v29 = vld [vmem:[#allocation11 + $0x14c] sm:$0xf]  ;;  %v593_v16 = vperm.slane %v3118_v15, 0  ;;  %v2746_v54 = vld [vmem:[#allocation13 + $0xd8] sm:$0xff] }
 0x18b   :  { %1378 = vmatpush.bf16.msrb.mxu2 %v2186_v20  ;;  %1391 = vmatpush.bf16.msrb.mxu3 %v2314_v36  ;;  %v2696_v20 = vld [vmem:[#allocation11 + $0x34c] sm:$0xf]  ;;  %v2347_v36 = vld [vmem:[#allocation11 + $0x358] sm:$0xf0] }
 0x18d   :  { %1353 = vmatmul.bf16.vlgmr.msrb.gmra.mxu0 %v3091_v59  ;;  %1366 = vmatmul.bf16.vlgmr.msrb.gmra.mxu1 %v3093_v60 }
 0x18e   :  { %1397 = vmatpush.bf16.msra.mxu0 %v2046_v37  ;;  %1410 = vmatpush.bf16.msra.mxu1 %v2174_v21  ;;  %v1966_v37 = vor.u32 %v2600_v25, %v1963_v26  ;;  %v2094_v21 = vor.u32 %v2632_v29, %v2091_v32  ;;  %v2737_v25 = vld [vmem:[#allocation13 + $0x90] sm:$0xff] }
 0x18f   :  { %1423 = vmatpush.bf16.msra.mxu2 %v2302_v30  ;;  %1436 = vmatpush.bf16.msra.mxu3 %v2430_v40  ;;  %v2222_v30 = vor.u32 %v2664_v33, %v2219_v35  ;;  %v2350_v40 = vor.u32 %v2696_v20, %v2347_v36  ;;  %v2736_v20 = vld [vmem:[#allocation13 + $0x88] sm:$0xff] }
 0x190   :  { %1379 = vmatmul.bf16.vlgmr.msrb.gmra.mxu2 %v3095_v61  ;;  %1392 = vmatmul.bf16.vlgmr.msrb.gmra.mxu3 %v3097_v62 }
 0x192   :  { %1398 = vmatpush.bf16.msra.mxu0 %v2030_v45  ;;  %1411 = vmatpush.bf16.msra.mxu1 %v2158_v46  ;;  %v1950_v45 = vor.u32 %v2596_v38, %v1947_v39  ;;  %v2078_v46 = vor.u32 %v2628_v41, %v2075_v34  ;;  %v2735_v38 = vld [vmem:[#allocation13 + $0x80] sm:$0xff]  ;;  %v2750_v39 = vld [vmem:[#allocation13 + $0xf8] sm:$0xff] }
 0x193   :  { %1424 = vmatpush.bf16.msra.mxu2 %v2286_v49  ;;  %1437 = vmatpush.bf16.msra.mxu3 %v2414_v50  ;;  %v2206_v49 = vor.u32 %v2660_v31, %v2203_v42  ;;  %v2334_v50 = vor.u32 %v2692_v43, %v2331_v44  ;;  %v2749_v42 = vld [vmem:[#allocation13 + $0xf0] sm:$0xff]  ;;  %v2748_v43 = vld [vmem:[#allocation13 + $0xe8] sm:$0xff] }
 0x196   :  { %1399 = vmatpush.bf16.msra.mxu0 %v2014_v57  ;;  %1412 = vmatpush.bf16.msra.mxu1 %v2142_v58  ;;  %v1934_v57 = vor.u32 %v2592_v47, %v1931_v48  ;;  %v2062_v58 = vor.u32 %v2624_v51, %v2059_v52 }
 0x197   :  { %1425 = vmatpush.bf16.msra.mxu2 %v2270_v1  ;;  %1438 = vmatpush.bf16.msra.mxu3 %v2398_v2  ;;  %v2726_v1 = vld [vmem:[#allocation13 + $0x38] sm:$0xff]  ;;  %v2725_v2 = vld [vmem:[#allocation13 + $0x30] sm:$0xff] }
 0x19a   :  { %1400 = vmatpush.bf16.msra.mxu0 %v1998_v9  ;;  %1413 = vmatpush.bf16.msra.mxu1 %v2126_v10  ;;  %v2732_v9 = vld [vmem:[#allocation13 + $0x68] sm:$0xff]  ;;  %v2742_v10 = vld [vmem:[#allocation13 + $0xb8] sm:$0xff] }
 0x19b   :  { %1426 = vmatpush.bf16.msra.mxu2 %v2254_v13  ;;  %1439 = vmatpush.bf16.msra.mxu3 %v2382_v14  ;;  %v2728_v13 = vld [vmem:[#allocation13 + $0x48] sm:$0xff] }
 0x19c   :  { %v2740_v14 = vld [vmem:[#allocation13 + $0xa8] sm:$0xff] }
 0x19e   :  { %1401 = vmatpush.bf16.msra.mxu0 %v1982_v23  ;;  %1414 = vmatpush.bf16.msra.mxu1 %v2110_v24  ;;  %v2738_v24 = vld [vmem:[#allocation13 + $0x98] sm:$0xff] }
 0x19f   :  { %1427 = vmatpush.bf16.msra.mxu2 %v2238_v27  ;;  %1440 = vmatpush.bf16.msra.mxu3 %v2366_v28 }
 0x1a2   :  { %1402 = vmatpush.bf16.msra.mxu0 %v1966_v37  ;;  %1415 = vmatpush.bf16.msra.mxu1 %v2094_v21  ;;  %v594_v21 = vperm.slane %v3118_v15, 1 }
 0x1a3   :  { %1428 = vmatpush.bf16.msra.mxu2 %v2222_v30  ;;  %1441 = vmatpush.bf16.msra.mxu3 %v2350_v40 }
 0x1a6   :  { %1403 = vmatpush.bf16.msra.mxu0 %v1950_v45  ;;  %1416 = vmatpush.bf16.msra.mxu1 %v2078_v46 }
 0x1a7   :  { %1429 = vmatpush.bf16.msra.mxu2 %v2206_v49  ;;  %1442 = vmatpush.bf16.msra.mxu3 %v2334_v50  ;;  %v2747_v50 = vld [vmem:[#allocation13 + $0xe0] sm:$0xff] }
 0x1aa   :  { %1404 = vmatpush.bf16.msra.mxu0 %v1934_v57  ;;  %1417 = vmatpush.bf16.msra.mxu1 %v2062_v58  ;;  %v595_v57 = vperm.slane %v3118_v15, 2 }
 0x1ab   :  { %1430 = vmatpush.bf16.msra.mxu2 %v2190_v63  ;;  %1443 = vmatpush.bf16.msra.mxu3 %v2318_v0  ;;  %v2745_v0 = vld [vmem:[#allocation13 + $0xd0] sm:$0xff] }
 0x1ad   :  { %1405 = vmatmul.bf16.vlgmr.msra.gmra.mxu0 %v3091_v59  ;;  %1418 = vmatmul.bf16.vlgmr.msra.gmra.mxu1 %v3093_v60  ;;  %v2720_v59 = vld [vmem:[#allocation13 + $0x8] sm:$0xff]  ;;  %v2719_v60 = vld [vmem:[#allocation13] sm:$0xff] }
 0x1ae   :  { %1717 = vmatpush.bf16.msrb.mxu0 %v2726_v1  ;;  %1431 = vmatmul.bf16.vlgmr.msra.gmra.mxu2 %v3095_v61  ;;  %v2731_v61 = vld [vmem:[#allocation13 + $0x60] sm:$0xff] }
 0x1af   :  { %1444 = vmatmul.bf16.vlgmr.msra.gmra.mxu3 %v3097_v62  ;;  %1730 = vmatpush.bf16.msrb.mxu1 %v2734_v6  ;;  %v2730_v62 = vld [vmem:[#allocation13 + $0x58] sm:$0xff] }
 0x1b0   :  { %1743 = vmatpush.bf16.msrb.mxu2 %v2742_v10  ;;  %1756 = vmatpush.bf16.msrb.mxu3 %v2750_v39 }
 0x1b2   :  { %1718 = vmatpush.bf16.msrb.mxu0 %v2725_v2  ;;  %v2744_v2 = vld [vmem:[#allocation13 + $0xc8] sm:$0xff] }
 0x1b3   :  { %1731 = vmatpush.bf16.msrb.mxu1 %v2733_v8 }
 0x1b4   :  { %1744 = vmatpush.bf16.msrb.mxu2 %v2741_v12  ;;  %1757 = vmatpush.bf16.msrb.mxu3 %v2749_v42 }
 0x1b6   :  { %1719 = vmatpush.bf16.msrb.mxu0 %v2724_v3 }
 0x1b7   :  { %1732 = vmatpush.bf16.msrb.mxu1 %v2732_v9 }
 0x1b8   :  { %1745 = vmatpush.bf16.msrb.mxu2 %v2740_v14  ;;  %1758 = vmatpush.bf16.msrb.mxu3 %v2748_v43 }
 0x1ba   :  { %1720 = vmatpush.bf16.msrb.mxu0 %v2723_v4 }
 0x1bb   :  { %1733 = vmatpush.bf16.msrb.mxu1 %v2731_v61 }
 0x1bc   :  { %1746 = vmatpush.bf16.msrb.mxu2 %v2739_v18  ;;  %1759 = vmatpush.bf16.msrb.mxu3 %v2747_v50 }
 0x1be   :  { %1721 = vmatpush.bf16.msrb.mxu0 %v2722_v5 }
 0x1bf   :  { %1734 = vmatpush.bf16.msrb.mxu1 %v2730_v62 }
 0x1c0   :  { %1747 = vmatpush.bf16.msrb.mxu2 %v2738_v24  ;;  %1760 = vmatpush.bf16.msrb.mxu3 %v2746_v54 }
 0x1c2   :  { %1722 = vmatpush.bf16.msrb.mxu0 %v2721_v7 }
 0x1c3   :  { %1735 = vmatpush.bf16.msrb.mxu1 %v2729_v11  ;;  %v596_v11 = vperm.slane %v3118_v15, 3 }
 0x1c4   :  { %1748 = vmatpush.bf16.msrb.mxu2 %v2737_v25  ;;  %1761 = vmatpush.bf16.msrb.mxu3 %v2745_v0 }
 0x1c6   :  { %1723 = vmatpush.bf16.msrb.mxu0 %v2720_v59  ;;  %v2743_v59 = vld [vmem:[#allocation13 + $0xc0] sm:$0xff] }
 0x1c7   :  { %1736 = vmatpush.bf16.msrb.mxu1 %v2728_v13 }
 0x1c8   :  { %1749 = vmatpush.bf16.msrb.mxu2 %v2736_v20  ;;  %1762 = vmatpush.bf16.msrb.mxu3 %v2744_v2 }
 0x1ca   :  { %1724 = vmatpush.bf16.msrb.mxu0 %v2719_v60 }
 0x1cb   :  { %1737 = vmatpush.bf16.msrb.mxu1 %v2727_v17 }
 0x1cc   :  { %1750 = vmatpush.bf16.msrb.mxu2 %v2735_v38  ;;  %1763 = vmatpush.bf16.msrb.mxu3 %v2743_v59 }
 0x1e9   :  { %v1250_v19 = vpop.f32.mrf.mxu0  ;;  %v1263_v22 = vpop.f32.mrf.mxu1 }
 0x1ea   :  { %v1251_v23 = vadd.f32 %v1250_v19, %v593_v16 }
 0x1ec   :  { %v1264_v26 = vadd.f32 %v1263_v22, %v1251_v23 }
 0x1f0   :  { %v1276_v27 = vpop.f32.mrf.mxu2  ;;  %v1289_v28 = vpop.f32.mrf.mxu3 }
 0x1f1   :  { %v1277_v29 = vadd.f32 %v1276_v27, %v1264_v26  ;;  %v1252_v32 = vpop.f32.mrf.mxu0  ;;  %v1265_v33 = vpop.f32.mrf.mxu1 }
 0x1f3   :  { %v1290_v35 = vadd.f32 %v1289_v28, %v1277_v29 }
 0x1f5   :  { %v1449_v36 = vmax.f32 %v1290_v35, 0.0 }
 0x1f7   :  { %v1453_v37 = vpack.c.bf16 %v1449_v36, %v1449_v36  ;;  %v2763_v36 = vld [vmem:[%s3138_s8] ss:$0 sm:$0xff] }
 0x1f8   :  { %v1278_v30 = vpop.f32.mrf.mxu2  ;;  %v1291_v40 = vpop.f32.mrf.mxu3 }
 0x1f9   :  { %1725 = vmatmul.bf16.vlgmr.msrb.gmra.mxu0 %v1453_v37  ;;  %v1302_v41 = vpop.f32.mrf.mxu0  ;;  %v1315_v34 = vpop.f32.mrf.mxu1 }
 0x1fa   :  { %v1303_v31 = vadd.f32 %v1302_v41, %v594_v21 }
 0x1fc   :  { %v1316_v44 = vadd.f32 %v1315_v34, %v1303_v31 }
 0x200   :  { %v1328_v45 = vpop.f32.mrf.mxu2  ;;  %v1341_v46 = vpop.f32.mrf.mxu3 }
 0x201   :  { %v1329_v47 = vadd.f32 %v1328_v45, %v1316_v44  ;;  %v1304_v48 = vpop.f32.mrf.mxu0  ;;  %v1317_v49 = vpop.f32.mrf.mxu1 }
 0x203   :  { %v1342_v51 = vadd.f32 %v1341_v46, %v1329_v47 }
 0x205   :  { %v1450_v52 = vmax.f32 %v1342_v51, 0.0 }
 0x207   :  { %v1454_v53 = vpack.c.bf16 %v1450_v52, %v1450_v52 }
 0x208   :  { %v1330_v55 = vpop.f32.mrf.mxu2  ;;  %v1343_v56 = vpop.f32.mrf.mxu3 }
 0x209   :  { %1738 = vmatmul.bf16.vlgmr.msrb.gmra.mxu1 %v1454_v53 }
 0x20a   :  { %v1354_v58 = vpop.f32.mrf.mxu0  ;;  %v1367_v63 = vpop.f32.mrf.mxu1 }
 0x20b   :  { %v1355_v1 = vadd.f32 %v1354_v58, %v595_v57 }
 0x20d   :  { %v1368_v3 = vadd.f32 %v1367_v63, %v1355_v1 }
 0x212   :  { %v1356_v7 = vpop.f32.mrf.mxu0  ;;  %v1369_v8 = vpop.f32.mrf.mxu1 }
 0x213   :  { %v1380_v4 = vpop.f32.mrf.mxu2  ;;  %v1393_v5 = vpop.f32.mrf.mxu3 }
 0x214   :  { %v1381_v6 = vadd.f32 %v1380_v4, %v1368_v3 }
 0x216   :  { %v1394_v9 = vadd.f32 %v1393_v5, %v1381_v6 }
 0x218   :  { %v1451_v60 = vmax.f32 %v1394_v9, 0.0 }
 0x21a   :  { %v1455_v61 = vpack.c.bf16 %v1451_v60, %v1451_v60 }
 0x21b   :  { %v1382_v62 = vpop.f32.mrf.mxu2  ;;  %v1395_v10 = vpop.f32.mrf.mxu3 }
 0x21c   :  { %1751 = vmatmul.bf16.vlgmr.msrb.gmra.mxu2 %v1455_v61 }
 0x22a   :  { %v1406_v12 = vpop.f32.mrf.mxu0  ;;  %v1419_v13 = vpop.f32.mrf.mxu1 }
 0x22b   :  { %v1407_v14 = vadd.f32 %v1406_v12, %v596_v11 }
 0x22d   :  { %v1420_v16 = vadd.f32 %v1419_v13, %v1407_v14 }
 0x231   :  { %v1432_v17 = vpop.f32.mrf.mxu2 }
 0x232   :  { %v1445_v18 = vpop.f32.mrf.mxu3  ;;  %v1433_v19 = vadd.f32 %v1432_v17, %v1420_v16  ;;  %v1408_v22 = vpop.f32.mrf.mxu0 }
 0x233   :  { %v1421_v23 = vpop.f32.mrf.mxu1 }
 0x234   :  { %v1446_v24 = vadd.f32 %v1445_v18, %v1433_v19 }
 0x236   :  { %v1452_v25 = vmax.f32 %v1446_v24, 0.0 }
 0x238   :  { %v1456_v26 = vpack.c.bf16 %v1452_v25, %v1452_v25 }
 0x239   :  { %v1434_v27 = vpop.f32.mrf.mxu2 }
 0x23a   :  { %v1447_v28 = vpop.f32.mrf.mxu3  ;;  %1764 = vmatmul.bf16.vlgmr.msrb.gmra.mxu3 %v1456_v26 }
 0x276   :  { %v1726_v29 = vpop.f32.mrf.mxu0 }
 0x277   :  { %v1727_v37 = vadd.f32 %v2763_v36, %v1726_v29 }
 0x27e   :  { %v1728_v32 = vpop.f32.mrf.mxu0 }
 0x286   :  { %v1739_v33 = vpop.f32.mrf.mxu1 }
 0x287   :  { %v1740_v21 = vadd.f32 %v1739_v33, %v1727_v37 }
 0x28e   :  { %v1741_v35 = vpop.f32.mrf.mxu1 }
 0x29f   :  { %v1752_v15 = vpop.f32.mrf.mxu2 }
 0x2a0   :  { %v1753_v38 = vadd.f32 %v1752_v15, %v1740_v21 }
 0x2a7   :  { %v1754_v20 = vpop.f32.mrf.mxu2 }
 0x2bd   :  { %v1765_v39 = vpop.f32.mrf.mxu3 }
 0x2be   :  { %v1766_v30 = vadd.f32 %v1765_v39, %v1753_v38 }
 0x2c0   :  { %2766 = vtanh.f32 %v1766_v30 }
 0x2c5   :  { %v1767_v40 = vpop.f32.mrf.mxu3 }
 0x2c6   :  { %v2767_v41 = vpop.eup %2766 }
 0x2c7   :  { %1770 = vst [vmem:[#allocation14] sm:$0xff] %v2767_v41 }
 0x2c8   :  { %1781 = dma.vmem_to_hbm [thread:$0]  %s1777_s1, 128, %s1779_s26, [#allocation4]  }
 0x2c9   :  { %2968 = dma.done.wait [#allocation4], 128  }
 0x2ca   :  { %2969 = vsyncadd [#allocation4], 4294967168 }
 0x2cb   :  { %1786 = vsyncpa [#allocation3], 1 }
 0x2cc   :  { %1787 = vsyncpa [#allocation6], 1 }
 0x2cd   :  { %1788 = vsyncpa [#allocation9], 1 }
 0x2ce   :  { %1789 = vsyncpa [#allocation12], 1 }
 0x2cf   :  { %1790 = vsyncpa [#allocation4], 1 }

</bundles_post_ra>
